<compile_context>
chip_gen: v7x
topology: tpu7x:2x2x1
jax: 0.10.0
libtpu: 0.0.40
codegen_flags: <defaults>
</compile_context>

<pallas_src>
import functools

import jax
import jax.numpy as jnp
from jax.experimental import pallas as pl
from jax.experimental.pallas import tpu as pltpu

NEG_SLOPE = 0.01   # torch.nn.LeakyReLU default
HEAD_PAD = 128     # lane-dense padding for the 2-wide output head
NUM_REL = 2


def _leaky(x):
    return jnp.where(x > 0, x, NEG_SLOPE * x)


# ---------------------------------------------------------------------------
# Kernel 1: input MLP + RGCN-layer-1 "pre" projections (row-tiled, grid=(n_i,))
# ---------------------------------------------------------------------------
def mlp_pre_kernel(des_ref, wd, bd, wi, bi, wpre, brg, hroot_ref, hrel_ref):
    emb = hroot_ref.shape[1]
    dot = functools.partial(jnp.dot, preferred_element_type=jnp.float32)
    # 768-deep matmul in bf16 (f32 accumulate); bias add + LeakyReLU in f32.
    d = _leaky(dot(des_ref[...].astype(jnp.bfloat16), wd[...]) + bd[...])
    x = _leaky(dot(d, wi[...]) + bi[...])
    # Single lane-dense (emb, 3*emb) pre-projection: [root | rel0 | rel1].
    h = dot(x, wpre[...])
    hroot_ref[...] = h[:, :emb] + brg[...]              # root path + bias stays f32
    hrel_ref[0] = h[:, emb:2 * emb].astype(hrel_ref.dtype)   # relation paths -> bf16
    hrel_ref[1] = h[:, 2 * emb:].astype(hrel_ref.dtype)


# ---------------------------------------------------------------------------
# Kernel 2: RGCN layer-1 aggregation + layer-2 "pre" projections (grid=(n_i, n_k))
#   acc[i] = hroot1[i] + sum_k A_pack[i,k] @ H_stack[k]
# ---------------------------------------------------------------------------
def agg_pre_kernel(hroot_ref, a_ref, h_ref, wpre, brg,
                   hroot2_ref, grel_ref, acc_ref):
    k = pl.program_id(1)

    @pl.when(k == 0)
    def _():
        acc_ref[...] = hroot_ref[...]

    # Single packed relation matmul per step (bf16 operands, f32 accumulate).
    acc_ref[...] += jnp.dot(a_ref[...], h_ref[...],
                            preferred_element_type=jnp.float32)

    @pl.when(k == pl.num_programs(1) - 1)
    def _():
        emb = hroot2_ref.shape[1]
        x = acc_ref[...]  # RGCN layer-1 output; dropout(p=0.3) is identity in eval mode
        h = jnp.dot(x, wpre[...], preferred_element_type=jnp.float32)
        hroot2_ref[...] = h[:, :emb] + brg[...]
        grel_ref[0] = h[:, emb:2 * emb].astype(grel_ref.dtype)
        grel_ref[1] = h[:, 2 * emb:].astype(grel_ref.dtype)


# ---------------------------------------------------------------------------
# Kernel 3: RGCN layer-2 aggregation + output head (grid=(n_i, n_k))
# ---------------------------------------------------------------------------
def agg_head_kernel(hroot2_ref, a_ref, g_ref, wo1, bo1, wo2p, bo2p,
                    out_ref, acc_ref):
    k = pl.program_id(1)

    @pl.when(k == 0)
    def _():
        acc_ref[...] = hroot2_ref[...]

    acc_ref[...] += jnp.dot(a_ref[...], g_ref[...],
                            preferred_element_type=jnp.float32)

    @pl.when(k == pl.num_programs(1) - 1)
    def _():
        dot = functools.partial(jnp.dot, preferred_element_type=jnp.float32)
        y = _leaky(dot(acc_ref[...], wo1[...]) + bo1[...])
        out_ref[...] = dot(y, wo2p[...]) + bo2p[...]   # lane-padded (width 128) head output


# ---------------------------------------------------------------------------
# JAX glue
# ---------------------------------------------------------------------------
def build_packed_adj(edge_index, edge_type, n_pad, num_relations=NUM_REL):
    """Relation-packed, row-mean-normalized adjacency [A0 | A1] at padded size.

    Built directly at (n_pad, R*n_pad) in one pass (scatter-add -> normalize -> bf16),
    so no separate O(N^2) jnp.pad / astype HBM round-trips. Duplicate edges count
    with multiplicity (matches PyG scatter_mean); padded rows/cols stay zero.
    No self loops are added (RGCNConv handles self via the root weight).
    """
    src, dst = edge_index[0], edge_index[1]
    col = src + edge_type * n_pad
    a = jnp.zeros((n_pad, num_relations * n_pad), jnp.float32).at[dst, col].add(1.0)
    a = a.reshape(n_pad, num_relations, n_pad)
    deg = jnp.sum(a, axis=-1, keepdims=True)
    a = a / jnp.where(deg > 0, deg, 1.0)
    return a.reshape(n_pad, num_relations * n_pad).astype(jnp.bfloat16)


def build_rgcn_adj(edge_index, edge_type, num_nodes, num_relations=NUM_REL):
    """Per-relation f32 dense normalized adjacency (reference path only)."""
    src, dst = edge_index[0], edge_index[1]
    adjs = []
    for r in range(num_relations):
        w = (edge_type == r).astype(jnp.float32)
        a = jnp.zeros((num_nodes, num_nodes), jnp.float32).at[dst, src].add(w)
        deg = jnp.sum(a, axis=1, keepdims=True)
        adjs.append(jnp.where(deg > 0, a / deg, 0.0))
    return adjs


def init_params(key, des_size, emb):
    def linear(k, fan_in, fan_out):
        k1, k2 = jax.random.split(k)
        bound = 1.0 / jnp.sqrt(jnp.float32(fan_in))
        w = jax.random.uniform(k1, (fan_in, fan_out), jnp.float32, -bound, bound)
        b = jax.random.uniform(k2, (1, fan_out), jnp.float32, -bound, bound)
        return w, b

    keys = jax.random.split(key, 7)
    p = {}
    p["wd"], p["bd"] = linear(keys[0], des_size, emb)    # linear_relu_des
    p["wi"], p["bi"] = linear(keys[1], emb, emb)         # linear_relu_input
    p["wroot"], p["brg"] = linear(keys[2], emb, emb)     # RGCNConv root + bias (shared by both calls)
    p["w0"], _ = linear(keys[3], emb, emb)               # RGCNConv relation-0 weight
    p["w1"], _ = linear(keys[4], emb, emb)               # RGCNConv relation-1 weight
    p["wo1"], p["bo1"] = linear(keys[5], emb, emb)       # linear_relu_output1
    p["wo2"], p["bo2"] = linear(keys[6], emb, 2)         # linear_output2
    return p


def botrgcn1_forward(des, tweet, num_prop, cat_prop, edge_index, edge_type,
                     params, *, tile=128):
    # tweet / num_prop / cat_prop accepted (torch signature) but unused:
    # their branches are commented out in BotRGCN1.forward.
    del tweet, num_prop, cat_prop

    n, d_in = des.shape
    emb = params["wi"].shape[0]

    # Pad node axis to a multiple of max(tile, 256) so the packed relation-K axis
    # (2 * n_pad) is divisible by a >=512 reduction tile. Padded nodes have no edges.
    row_multiple = max(tile, 256)
    n_pad = int(pl.cdiv(n, row_multiple)) * row_multiple
    if n_pad != n:
        des = jnp.pad(des, ((0, n_pad - n), (0, 0)))

    a_pack = build_packed_adj(edge_index, edge_type, n_pad)

    kdim = NUM_REL * n_pad
    tk = kdim
    for cand in (2048, 1024, 512):         # largest reduction tile that divides kdim
        if kdim % cand == 0:
            tk = cand
            break
    n_i = n_pad // tile
    n_k = kdim // tk

    # One-time weight packing (tiny).
    wd = params["wd"].astype(jnp.bfloat16)
    wpre = jnp.concatenate([params["wroot"], params["w0"], params["w1"]], axis=1)  # (emb, 3*emb)
    wo2p = jnp.zeros((emb, HEAD_PAD), jnp.float32).at[:, :2].set(params["wo2"])
    bo2p = jnp.zeros((1, HEAD_PAD), jnp.float32).at[:, :2].set(params["bo2"])

    cparams_1d = pltpu.CompilerParams(
        dimension_semantics=("parallel",), vmem_limit_bytes=48 << 20)
    cparams_2d = pltpu.CompilerParams(
        dimension_semantics=("parallel", "arbitrary"), vmem_limit_bytes=48 << 20)

    row_spec = pl.BlockSpec((tile, emb), lambda i, k: (i, 0))
    adj_spec = pl.BlockSpec((tile, tk), lambda i, k: (i, k))
    col_spec = pl.BlockSpec((tk, emb), lambda i, k: (k, 0))
    wpre_spec = pl.BlockSpec((emb, 3 * emb), lambda i, k: (0, 0))
    bias_spec = pl.BlockSpec((1, emb), lambda i, k: (0, 0))
    rel_out_spec = pl.BlockSpec((NUM_REL, tile, emb), lambda i, k: (0, i, 0))

    # ---- Kernel 1: input MLP + layer-1 pre-projections -----------------------
    hroot1, hrel1 = pl.pallas_call(
        mlp_pre_kernel,
        out_shape=(jax.ShapeDtypeStruct((n_pad, emb), jnp.float32),
                   jax.ShapeDtypeStruct((NUM_REL, n_pad, emb), jnp.bfloat16)),
        grid=(n_i,),
        in_specs=[pl.BlockSpec((tile, d_in), lambda i: (i, 0)),
                  pl.BlockSpec((d_in, emb), lambda i: (0, 0)),
                  pl.BlockSpec((1, emb), lambda i: (0, 0)),
                  pl.BlockSpec((emb, emb), lambda i: (0, 0)),
                  pl.BlockSpec((1, emb), lambda i: (0, 0)),
                  pl.BlockSpec((emb, 3 * emb), lambda i: (0, 0)),
                  pl.BlockSpec((1, emb), lambda i: (0, 0))],
        out_specs=(pl.BlockSpec((tile, emb), lambda i: (i, 0)),
                   pl.BlockSpec((NUM_REL, tile, emb), lambda i: (0, i, 0))),
        compiler_params=cparams_1d,
    )(des, wd, params["bd"], params["wi"], params["bi"], wpre, params["brg"])

    # Free reshape: stacked relation features (2, n_pad, emb) -> (2*n_pad, emb).
    h_stack = hrel1.reshape(kdim, emb)

    # ---- Kernel 2: layer-1 aggregation + layer-2 pre-projections -------------
    hroot2, grel = pl.pallas_call(
        agg_pre_kernel,
        out_shape=(jax.ShapeDtypeStruct((n_pad, emb), jnp.float32),
                   jax.ShapeDtypeStruct((NUM_REL, n_pad, emb), jnp.bfloat16)),
        grid=(n_i, n_k),
        in_specs=[row_spec, adj_spec, col_spec, wpre_spec, bias_spec],
        out_specs=(row_spec, rel_out_spec),
        scratch_shapes=[pltpu.VMEM((tile, emb), jnp.float32)],
        compiler_params=cparams_2d,
    )(hroot1, a_pack, h_stack, wpre, params["brg"])

    g_stack = grel.reshape(kdim, emb)

    # ---- Kernel 3: layer-2 aggregation + output head --------------------------
    out_pad = pl.pallas_call(
        agg_head_kernel,
        out_shape=jax.ShapeDtypeStruct((n_pad, HEAD_PAD), jnp.float32),
        grid=(n_i, n_k),
        in_specs=[row_spec, adj_spec, col_spec,
                  pl.BlockSpec((emb, emb), lambda i, k: (0, 0)),
                  bias_spec,
                  pl.BlockSpec((emb, HEAD_PAD), lambda i, k: (0, 0)),
                  pl.BlockSpec((1, HEAD_PAD), lambda i, k: (0, 0))],
        out_specs=pl.BlockSpec((tile, HEAD_PAD), lambda i, k: (i, 0)),
        scratch_shapes=[pltpu.VMEM((tile, emb), jnp.float32)],
        compiler_params=cparams_2d,
    )(hroot2, a_pack, g_stack, params["wo1"], params["bo1"], wo2p, bo2p)

    return out_pad[:n, :2]


def botrgcn1_reference(des, edge_index, edge_type, params):
    """Pure-JAX f32 reference matching the torch BotRGCN1 forward (eval mode)."""
    a0, a1 = build_rgcn_adj(edge_index, edge_type, des.shape[0])
    d = _leaky(des @ params["wd"] + params["bd"])
    x = _leaky(d @ params["wi"] + params["bi"])

    def rgcn(x):
        return (x @ params["wroot"]
                + a0 @ (x @ params["w0"])
                + a1 @ (x @ params["w1"])
                + params["brg"])

    x = rgcn(x)
    x = rgcn(x)  # dropout identity (eval mode), shared weights
    y = _leaky(x @ params["wo1"] + params["bo1"])
    return y @ params["wo2"] + params["bo2"]


if __name__ == "__main__":
    # Small shapes consistent with the module defaults (des_size=768, emb=128, 2 relations).
    N_NODES = 200            # not a multiple of 256 -> exercises the padding path
    DES_SIZE = 768
    TWEET_SIZE = 768
    NUM_PROP_SIZE = 6
    CAT_PROP_SIZE = 11
    EMB = 128
    N_EDGES = 1000

    key = jax.random.PRNGKey(0)
    k_des, k_tw, k_np, k_cp, k_src, k_dst, k_et, k_par = jax.random.split(key, 8)

    des = jax.random.normal(k_des, (N_NODES, DES_SIZE), jnp.float32)
    tweet = jax.random.normal(k_tw, (N_NODES, TWEET_SIZE), jnp.float32)
    num_prop = jax.random.normal(k_np, (N_NODES, NUM_PROP_SIZE), jnp.float32)
    cat_prop = jax.random.normal(k_cp, (N_NODES, CAT_PROP_SIZE), jnp.float32)
    edge_index = jnp.stack([
        jax.random.randint(k_src, (N_EDGES,), 0, N_NODES),
        jax.random.randint(k_dst, (N_EDGES,), 0, N_NODES),
    ], axis=0).astype(jnp.int32)
    edge_type = jax.random.randint(k_et, (N_EDGES,), 0, NUM_REL).astype(jnp.int32)

    params = init_params(k_par, DES_SIZE, EMB)

    out = botrgcn1_forward(des, tweet, num_prop, cat_prop, edge_index, edge_type, params)
    out = jax.block_until_ready(out)

    ref = botrgcn1_reference(des, edge_index, edge_type, params)
    assert out.shape == (N_NODES, 2)
    max_err = float(jnp.max(jnp.abs(out - ref)))
    # bf16 adjacency / relation features / first-layer matmul vs f32 reference -> small delta.
    assert jnp.allclose(out, ref, atol=3e-2, rtol=3e-2), \
        f"mismatch vs reference (max abs err {max_err})"

    print("KERNEL_OK")
</pallas_src>

<mosaic_0001>
module attributes {stable_mosaic.version = 11 : i64} {
  func.func @mlp_pre_kernel(%arg0: i32, %arg1: memref<128x768xf32, #tpu.memory_space<vmem>>, %arg2: memref<768x128xbf16, #tpu.memory_space<vmem>>, %arg3: memref<1x128xf32, #tpu.memory_space<vmem>>, %arg4: memref<128x128xf32, #tpu.memory_space<vmem>>, %arg5: memref<1x128xf32, #tpu.memory_space<vmem>>, %arg6: memref<128x384xf32, #tpu.memory_space<vmem>>, %arg7: memref<1x128xf32, #tpu.memory_space<vmem>>, %arg8: memref<128x128xf32, #tpu.memory_space<vmem>>, %arg9: memref<2x128x128xbf16, #tpu.memory_space<vmem>>) attributes {dimension_semantics = [#tpu.dimension_semantics<parallel>], iteration_bounds = array<i64: 2>, scalar_prefetch = 0 : i64, scratch_operands = 0 : i64, tpu.core_type = #tpu.core_type<tc>, window_params = [{transform_indices = @transform_0, window_bounds = array<i64: 128, 768>}, {pipeline_mode = #tpu.pipeline_mode<synchronous>, transform_indices = @transform_1, window_bounds = array<i64: 768, 128>}, {pipeline_mode = #tpu.pipeline_mode<synchronous>, transform_indices = @transform_2, window_bounds = array<i64: 1, 128>}, {pipeline_mode = #tpu.pipeline_mode<synchronous>, transform_indices = @transform_3, window_bounds = array<i64: 128, 128>}, {pipeline_mode = #tpu.pipeline_mode<synchronous>, transform_indices = @transform_4, window_bounds = array<i64: 1, 128>}, {pipeline_mode = #tpu.pipeline_mode<synchronous>, transform_indices = @transform_5, window_bounds = array<i64: 128, 384>}, {pipeline_mode = #tpu.pipeline_mode<synchronous>, transform_indices = @transform_6, window_bounds = array<i64: 1, 128>}, {transform_indices = @transform_7, window_bounds = array<i64: 128, 128>}, {transform_indices = @transform_8, window_bounds = array<i64: 2, 128, 128>}]} {
    %c0 = arith.constant 0 : index
    %c0_0 = arith.constant 0 : index
    %0 = vector.load %arg1[%c0, %c0_0] : memref<128x768xf32, #tpu.memory_space<vmem>>, vector<128x768xf32>
    %1 = arith.truncf %0 : vector<128x768xf32> to vector<128x768xbf16>
    %c0_1 = arith.constant 0 : index
    %c0_2 = arith.constant 0 : index
    %2 = vector.load %arg2[%c0_1, %c0_2] : memref<768x128xbf16, #tpu.memory_space<vmem>>, vector<768x128xbf16>
    %cst = arith.constant dense<0.000000e+00> : vector<128x128xf32>
    %3 = tpu.matmul %1, %2, %cst {dimension_numbers = #tpu.dot_dimension_numbers<[1], [0], [0], [1], [0, 0, 1, 1], [], []>} : vector<128x768xbf16>, vector<768x128xbf16>, vector<128x128xf32> -> vector<128x128xf32>
    %c0_3 = arith.constant 0 : index
    %c0_4 = arith.constant 0 : index
    %4 = vector.load %arg3[%c0_3, %c0_4] : memref<1x128xf32, #tpu.memory_space<vmem>>, vector<1x128xf32>
    %5 = vector.broadcast %4 : vector<1x128xf32> to vector<128x128xf32>
    %6 = arith.addf %3, %5 : vector<128x128xf32>
    %cst_5 = arith.constant 0.000000e+00 : f32
    %7 = vector.broadcast %cst_5 : f32 to vector<128x128xf32>
    %8 = arith.cmpf ogt, %6, %7 : vector<128x128xf32>
    %cst_6 = arith.constant 0.00999999977 : f32
    %9 = vector.broadcast %cst_6 : f32 to vector<128x128xf32>
    %10 = arith.mulf %9, %6 : vector<128x128xf32>
    %11 = arith.select %8, %6, %10 : vector<128x128xi1>, vector<128x128xf32>
    %c0_7 = arith.constant 0 : index
    %c0_8 = arith.constant 0 : index
    %12 = vector.load %arg4[%c0_7, %c0_8] : memref<128x128xf32, #tpu.memory_space<vmem>>, vector<128x128xf32>
    %cst_9 = arith.constant dense<0.000000e+00> : vector<128x128xf32>
    %13 = tpu.matmul %11, %12, %cst_9 {dimension_numbers = #tpu.dot_dimension_numbers<[1], [0], [0], [1], [0, 0, 1, 1], [], []>} : vector<128x128xf32>, vector<128x128xf32>, vector<128x128xf32> -> vector<128x128xf32>
    %c0_10 = arith.constant 0 : index
    %c0_11 = arith.constant 0 : index
    %14 = vector.load %arg5[%c0_10, %c0_11] : memref<1x128xf32, #tpu.memory_space<vmem>>, vector<1x128xf32>
    %15 = vector.broadcast %14 : vector<1x128xf32> to vector<128x128xf32>
    %16 = arith.addf %13, %15 : vector<128x128xf32>
    %cst_12 = arith.constant 0.000000e+00 : f32
    %17 = vector.broadcast %cst_12 : f32 to vector<128x128xf32>
    %18 = arith.cmpf ogt, %16, %17 : vector<128x128xf32>
    %cst_13 = arith.constant 0.00999999977 : f32
    %19 = vector.broadcast %cst_13 : f32 to vector<128x128xf32>
    %20 = arith.mulf %19, %16 : vector<128x128xf32>
    %21 = arith.select %18, %16, %20 : vector<128x128xi1>, vector<128x128xf32>
    %c0_14 = arith.constant 0 : index
    %c0_15 = arith.constant 0 : index
    %22 = vector.load %arg6[%c0_14, %c0_15] : memref<128x384xf32, #tpu.memory_space<vmem>>, vector<128x384xf32>
    %cst_16 = arith.constant dense<0.000000e+00> : vector<128x384xf32>
    %23 = tpu.matmul %21, %22, %cst_16 {dimension_numbers = #tpu.dot_dimension_numbers<[1], [0], [0], [1], [0, 0, 1, 1], [], []>} : vector<128x128xf32>, vector<128x384xf32>, vector<128x384xf32> -> vector<128x384xf32>
    %24 = vector.extract_strided_slice %23 {offsets = [0, 0], sizes = [128, 128], strides = [1, 1]} : vector<128x384xf32> to vector<128x128xf32>
    %c0_17 = arith.constant 0 : index
    %c0_18 = arith.constant 0 : index
    %25 = vector.load %arg7[%c0_17, %c0_18] : memref<1x128xf32, #tpu.memory_space<vmem>>, vector<1x128xf32>
    %26 = vector.broadcast %25 : vector<1x128xf32> to vector<128x128xf32>
    %27 = arith.addf %24, %26 : vector<128x128xf32>
    %c0_19 = arith.constant 0 : index
    %c0_20 = arith.constant 0 : index
    %28 = vector.load %arg8[%c0_19, %c0_20] : memref<128x128xf32, #tpu.memory_space<vmem>>, vector<128x128xf32>
    tpu.vector_store %arg8[%c0_19, %c0_20], %27 {strides = array<i32>} : memref<128x128xf32, #tpu.memory_space<vmem>>, vector<128x128xf32>,
    %29 = vector.extract_strided_slice %23 {offsets = [0, 128], sizes = [128, 128], strides = [1, 1]} : vector<128x384xf32> to vector<128x128xf32>
    %30 = arith.truncf %29 : vector<128x128xf32> to vector<128x128xbf16>
    %c0_21 = arith.constant 0 : index
    %c0_22 = arith.constant 0 : index
    %c0_23 = arith.constant 0 : index
    %31 = vector.load %arg9[%c0_21, %c0_22, %c0_23] : memref<2x128x128xbf16, #tpu.memory_space<vmem>>, vector<1x128x128xbf16>
    %32 = vector.shape_cast %31 : vector<1x128x128xbf16> to vector<128x128xbf16>
    %33 = vector.shape_cast %30 : vector<128x128xbf16> to vector<1x128x128xbf16>
    tpu.vector_store %arg9[%c0_21, %c0_22, %c0_23], %33 {strides = array<i32>} : memref<2x128x128xbf16, #tpu.memory_space<vmem>>, vector<1x128x128xbf16>,
    %34 = vector.extract_strided_slice %23 {offsets = [0, 256], sizes = [128, 128], strides = [1, 1]} : vector<128x384xf32> to vector<128x128xf32>
    %35 = arith.truncf %34 : vector<128x128xf32> to vector<128x128xbf16>
    %c1 = arith.constant 1 : index
    %c0_24 = arith.constant 0 : index
    %c0_25 = arith.constant 0 : index
    %36 = vector.load %arg9[%c1, %c0_24, %c0_25] : memref<2x128x128xbf16, #tpu.memory_space<vmem>>, vector<1x128x128xbf16>
    %37 = vector.shape_cast %36 : vector<1x128x128xbf16> to vector<128x128xbf16>
    %38 = vector.shape_cast %35 : vector<128x128xbf16> to vector<1x128x128xbf16>
    tpu.vector_store %arg9[%c1, %c0_24, %c0_25], %38 {strides = array<i32>} : memref<2x128x128xbf16, #tpu.memory_space<vmem>>, vector<1x128x128xbf16>,
    return
  }
  func.func @transform_0(%arg0: i32) -> (i32, i32) {
    %c0_i32 = arith.constant 0 : i32
    %c0_i32_0 = arith.constant 0 : i32
    return %arg0, %c0_i32 : i32, i32
  }
  func.func @transform_1(%arg0: i32) -> (i32, i32) {
    %c0_i32 = arith.constant 0 : i32
    %c0_i32_0 = arith.constant 0 : i32
    %c0_i32_1 = arith.constant 0 : i32
    return %c0_i32, %c0_i32_0 : i32, i32
  }
  func.func @transform_2(%arg0: i32) -> (i32, i32) {
    %c0_i32 = arith.constant 0 : i32
    %c0_i32_0 = arith.constant 0 : i32
    %c0_i32_1 = arith.constant 0 : i32
    return %c0_i32, %c0_i32_0 : i32, i32
  }
  func.func @transform_3(%arg0: i32) -> (i32, i32) {
    %c0_i32 = arith.constant 0 : i32
    %c0_i32_0 = arith.constant 0 : i32
    %c0_i32_1 = arith.constant 0 : i32
    return %c0_i32, %c0_i32_0 : i32, i32
  }
  func.func @transform_4(%arg0: i32) -> (i32, i32) {
    %c0_i32 = arith.constant 0 : i32
    %c0_i32_0 = arith.constant 0 : i32
    %c0_i32_1 = arith.constant 0 : i32
    return %c0_i32, %c0_i32_0 : i32, i32
  }
  func.func @transform_5(%arg0: i32) -> (i32, i32) {
    %c0_i32 = arith.constant 0 : i32
    %c0_i32_0 = arith.constant 0 : i32
    %c0_i32_1 = arith.constant 0 : i32
    return %c0_i32, %c0_i32_0 : i32, i32
  }
  func.func @transform_6(%arg0: i32) -> (i32, i32) {
    %c0_i32 = arith.constant 0 : i32
    %c0_i32_0 = arith.constant 0 : i32
    %c0_i32_1 = arith.constant 0 : i32
    return %c0_i32, %c0_i32_0 : i32, i32
  }
  func.func @transform_7(%arg0: i32) -> (i32, i32) {
    %c0_i32 = arith.constant 0 : i32
    %c0_i32_0 = arith.constant 0 : i32
    return %arg0, %c0_i32 : i32, i32
  }
  func.func @transform_8(%arg0: i32) -> (i32, i32, i32) {
    %c0_i32 = arith.constant 0 : i32
    %c0_i32_0 = arith.constant 0 : i32
    %c0_i32_1 = arith.constant 0 : i32
    return %c0_i32, %arg0, %c0_i32_0 : i32, i32, i32
  }
}

</mosaic_0001>

<bundles_post_ra>
// kernel: tpu_custom_call.1
= control target key start
LH: loop header
LB: loop body
LE: loop exit
PB: predicated region body
PF: predicated region fallthrough
CT: control target
= control target key end

     0   :  { %s3899_s0 = inlined_call_operand.hbm [shape: f32[256,768], index: 0, kind: input, shape index: {}]   ;;  %s3900_s1 = inlined_call_operand.hbm [shape: bf16[768,128], index: 1, kind: input, shape index: {}]   ;;  %s3901_s2 = inlined_call_operand.vmem [shape: f32[1,128], index: 2, kind: input, shape index: {}]   ;;  %s3902_s3 = inlined_call_operand.hbm [shape: f32[128,128], index: 3, kind: input, shape index: {}]   ;;  %s3903_s4 = inlined_call_operand.vmem [shape: f32[1,128], index: 4, kind: input, shape index: {}]   ;;  %s3904_s5 = inlined_call_operand.hbm [shape: f32[128,384], index: 5, kind: input, shape index: {}]   ;;  %s3905_s6 = inlined_call_operand.vmem [shape: f32[1,128], index: 6, kind: input, shape index: {}]   ;;  %s3906_s7 = inlined_call_operand.hbm [shape: f32[256,128], index: 7, kind: output, shape index: {0}]   ;;  %s3907_s8 = inlined_call_operand.hbm [shape: bf16[2,256,128], index: 8, kind: output, shape index: {1}]  }
   0x1   :  { %3912 = sst [smem:[#allocation21_spill]] %s3900_s1 }
   0x2   :  { %14 = vsyncpa [#allocation3], 0 }
   0x3   :  { %16 = vsyncpa [#allocation3 + $0x1], 0 }
   0x4   :  { %17 = vsyncpa [#allocation6], 0 }
   0x5   :  { %18 = vsyncpa [#allocation9], 0 }
   0x6   :  { %19 = vsyncpa [#allocation4], 0 }
   0x7   :  { %21 = vsyncpa [#allocation4 + $0x1], 0 }
   0x8   :  { %22 = vsyncpa [#allocation12], 0 }
   0x9   :  { %24 = vsyncpa [#allocation12 + $0x1], 0  ;;  %s3360_s27 = smov 0   ;;  %s3362_s28 = smov 0  }
   0xa   :  { %s3364_s29 = smov 0   ;;  %s3366_s30 = smov 0  }
   0xb LB: > { %s3381_s9 = sadd.s32 4294967295, %s3290_s30   ;;  %s2226_s10 = sadd.s32 4294967294, %s3290_s30   ;;  %s3290_s30 = sphi %s3366_s30, %s3935_s30   ;;  %s3286_s29 = sphi %s3364_s29, %s3934_s29   ;;  %s3282_s28 = sphi %s3362_s28, %s3933_s28   ;;  %s3278_s27 = sphi %s3360_s27, %s3932_s27  }
   0xc   : > { %p50_p0 = scmp.ne.s32.totalorder %s3282_s28, %s3278_s27  ;;  %p3908_p1 = scmp.eq.s32.totalorder %s3381_s9, 0 }
   0xd   : > { %p206_p3 = scmp.eq.s32.totalorder %s2226_s10, 1  ;;  %p2227_p5 = scmp.ge.s32.totalorder %s3290_s30, 1 }
   0xe   : > { %p3390_p4 = por %p3908_p1, %p50_p0  ;;  %p239_p7 = scmp.lt.s32.totalorder %s3290_s30, 3 }
   0xf   : > { %p3395_p6 = por %p206_p3, %p50_p0  ;;  %s3292_s14 = smov [#allocation5]  }
  0x10   : > { %s3913_s11 = scalar_select %p3390_p4, 1, 0 }
  0x11   : > { %s3914_s12 = scalar_select %p3395_p6, 1, 0 }
  0x12   : > { %p3400_p8 = pnand %p2227_p5, %p239_p7  ;;  %s251_s15 = sshll.u32 %s3292_s14, 4  ;;  %s3404_s15 = int_to_ptr.vmem [resolvable:$true] %s251_s15 }
  0x13   : > { %3915 = sst [smem:[#allocation20_spill]] %s3914_s12  ;;  %s3293_s17 = smov [#allocation7]  }
  0x14   : > { %s3916_s13 = scalar_select %p3400_p8, 1, 0 }
  0x15   : > { %p2968_p9 = pneg %p3400_p8  ;;  %s267_s18 = sshll.u32 %s3293_s17, 4  ;;  %s3415_s18 = int_to_ptr.vmem [resolvable:$true] %s267_s18 }
  0x16   : > { %s3918_s1 = sld [smem:[#allocation21_spill]] }
  0x17   : > { %p3411_p11 = pnand %p2968_p9, %p3908_p1 }
  0x19   : > { %p3425_p13 = pneg %p3411_p11 }
  0x1c   : > { %s3098_s21 = scalar_lea.hbm %s3918_s1, 6144 }
  0x1d   : > { %p3099_p12 = scmp.ne.s32.totalorder %s3918_s1, %s3098_s21  ;;  %p3105_p5 = scmp.lt.u32.totalorder %s3098_s21, %s3918_s1 }
  0x1f   : > { %p3101_p0 = pnand %p3425_p13, %p3099_p12 }
  0x21   : > { %p3102_p3 = pneg %p3101_p0 }
  0x23   : > { %p3107_p7 = pnand %p3105_p5, %p3102_p3 }
  0x25   : > { %3110 = shalt.err (!%p3107_p7)
}
  0x26   : > { %s3111_s10 = scalar_lea.vmem %s3404_s15, 6144  ;;  %p3119_p2 = scmp.lt.s32.totalorder %s3404_s15, %s3404_s15 }
  0x27   : > { %p3112_p9 = scmp.ne.s32.totalorder %s3404_s15, %s3111_s10  ;;  %p3120_p6 = scmp.lt.s32.totalorder %s3111_s10, %s3111_s10 }
  0x29   : > { %p3114_p10 = pnand %p3112_p9, %p3425_p13  ;;  %p3121_p12 = por %p3120_p6, %p3119_p2 }
  0x2b   : > { %p3115_p1 = pneg %p3114_p10 }
  0x2d   : > { %p3122_p0 = pnand %p3121_p12, %p3115_p1 }
  0x2f   : > { %3125 = shalt.err (!%p3122_p0)
}
  0x30   : > { %s3294_s14 = smov 64   ;;  %s3295_s17 = smov 4  }
  0x31   : > { %2971 = dma.hbm_to_vmem [thread:$0]  (!%p3411_p11), %s3918_s1, 6144, %s3404_s15, [#allocation6], %s3294_s14, %s3294_s14, %s3295_s17  }
  0x32   : > { %s3126_s23 = scalar_lea.hbm %s3902_s3, 2048 }
  0x33   : > { %p3127_p2 = scmp.ne.s32.totalorder %s3902_s3, %s3126_s23  ;;  %p3133_p10 = scmp.lt.u32.totalorder %s3126_s23, %s3902_s3 }
  0x35   : > { %p3129_p1 = pnand %p3127_p2, %p3425_p13 }
  0x37   : > { %p3130_p6 = pneg %p3129_p1 }
  0x39   : > { %p3135_p3 = pnand %p3133_p10, %p3130_p6 }
  0x3b   : > { %3138 = shalt.err (!%p3135_p3)
}
  0x3c   : > { %s3139_s15 = scalar_lea.vmem %s3415_s18, 2048  ;;  %p3147_p12 = scmp.lt.s32.totalorder %s3415_s18, %s3415_s18 }
  0x3d   : > { %p3140_p5 = scmp.ne.s32.totalorder %s3415_s18, %s3139_s15  ;;  %p3148_p0 = scmp.lt.s32.totalorder %s3139_s15, %s3139_s15 }
  0x3f   : > { %p3142_p7 = pnand %p3140_p5, %p3425_p13  ;;  %p3149_p2 = por %p3148_p0, %p3147_p12 }
  0x41   : > { %p3143_p9 = pneg %p3142_p7 }
  0x43   : > { %p3150_p1 = pnand %p3149_p2, %p3143_p9 }
  0x45   : > { %3153 = shalt.err (!%p3150_p1)
}
  0x46   : > { %s3296_s14 = smov 128   ;;  %s3297_s12 = smov 8  }
  0x47   : > { %2974 = dma.hbm_to_vmem [thread:$0]  (!%p3411_p11), %s3902_s3, 2048, %s3415_s18, [#allocation6], %s3296_s14, %s3296_s14, %s3297_s12  }
  0x48   : > { %s3298_s20 = smov [#allocation8]   ;;  %s3154_s25 = scalar_lea.hbm %s3904_s5, 6144 }
  0x49   : > { %s283_s21 = sshll.u32 %s3298_s20, 4  ;;  %p3155_p6 = scmp.ne.s32.totalorder %s3904_s5, %s3154_s25  ;;  %s284_s21 = int_to_ptr.vmem [resolvable:$true] %s283_s21 }
  0x4a   : > { %p3161_p5 = scmp.lt.u32.totalorder %s3154_s25, %s3904_s5 }
  0x4b   : > { %p3157_p10 = pnand %p3155_p6, %p3425_p13 }
  0x4d   : > { %p3158_p3 = pneg %p3157_p10 }
  0x4f   : > { %p3163_p7 = pnand %p3161_p5, %p3158_p3 }
  0x51   : > { %3166 = shalt.err (!%p3163_p7)
}
  0x52   : > { %s3167_s18 = scalar_lea.vmem %s284_s21, 6144  ;;  %p3175_p2 = scmp.lt.s32.totalorder %s284_s21, %s284_s21 }
  0x53   : > { %p3168_p9 = scmp.ne.s32.totalorder %s284_s21, %s3167_s18  ;;  %p3176_p1 = scmp.lt.s32.totalorder %s3167_s18, %s3167_s18 }
  0x55   : > { %p3170_p12 = pnand %p3168_p9, %p3425_p13  ;;  %p3177_p4 = por %p3176_p1, %p3175_p2 }
  0x57   : > { %p3171_p0 = pneg %p3170_p12 }
  0x59   : > { %p3178_p8 = pnand %p3177_p4, %p3171_p0 }
  0x5b   : > { %3181 = shalt.err (!%p3178_p8)
}
  0x5c   : > { %s3299_s14 = smov 384   ;;  %s3300_s1 = smov 24  }
  0x5d   : > { %2977 = dma.hbm_to_vmem [thread:$0]  (!%p3411_p11), %s3904_s5, 6144, %s284_s21, [#allocation9], %s3299_s14, %s3299_s14, %s3300_s1  }
  0x5e   : > { %s3488_s17 = sadd.s32 1, %s3290_s30   ;;  %s37_s20 = sadd.s32 1, %s3286_s29 }
  0x5f   : > { %s34_s19 = ssub.s32 %s3290_s30, %s3488_s17  ;;  %p44_p8 = scmp.ne.s32.totalorder %s3286_s29, %s3282_s28 }
  0x60   : > { %p35_p4 = scmp.eq.s32.totalorder %s34_s19, 0  ;;  %p45_p13 = scmp.eq.s32.totalorder %s3290_s30, 0 }
  0x61   : > { %p2992_p6 = scmp.lt.s32.totalorder %s3290_s30, 2  ;;  %p3920_p3 = scmp.eq.s32.totalorder %s3381_s9, 1 }
  0x62   : > { %s3498_s22 = scalar_select %p35_p4, %s3286_s29, %s37_s20  }
  0x63   : > { %p46_p10 = por %p45_p13, %p44_p8  ;;  %p3502_p5 = por %p3920_p3, %p44_p8 }
  0x64   : > { %s300_s16 = sand.u32 1, %s3286_s29   ;;  %s2942_s25 = smul.u32 12288, %s3290_s30 }
  0x65   : > { %s2941_s21 = smul.u32 768, %s300_s16  ;;  %p3513_p11 = pnand %p2992_p6, %p46_p10 }
  0x66   : > { %s3511_s15 = scalar_lea.hbm %s3899_s0, %s2942_s25  ;;  %s3519_s24 = scalar_lea.sflag [#allocation3], %s300_s16 }
  0x67   : > { %s304_s14 = scalar_lea.vmem [#allocation2], %s2941_s21  ;;  %s3182_s12 = scalar_lea.hbm %s3511_s15, 12288 }
  0x68   : > { %s312_s1 = sshll.u32 %s304_s14, 4  ;;  %p3183_p7 = scmp.ne.s32.totalorder %s3511_s15, %s3182_s12  ;;  %s3517_s1 = int_to_ptr.vmem [resolvable:$true] %s312_s1 }
  0x69   : > { %p3184_p9 = pneg %p3513_p11  ;;  %s3187_s25 = scalar_lea.hbm %s3899_s0, 24576 }
  0x6a   : > { %p3188_p2 = scmp.lt.u32.totalorder %s3511_s15, %s3899_s0  ;;  %p3189_p1 = scmp.lt.u32.totalorder %s3187_s25, %s3182_s12 }
  0x6b   : > { %p3185_p12 = pnand %p3184_p9, %p3183_p7  ;;  %p3191_p8 = scmp.lt.u32.totalorder %s3182_s12, %s3511_s15 }
  0x6c   : > { %p3190_p4 = por %p3189_p1, %p3188_p2 }
  0x6d   : > { %p3186_p0 = pneg %p3185_p12 }
  0x6e   : > { %p3192_p13 = por %p3191_p8, %p3190_p4 }
  0x70   : > { %p3193_p6 = pnand %p3192_p13, %p3186_p0 }
  0x72   : > { %3196 = shalt.err (!%p3193_p6)
}
  0x73   : > { %s3197_s16 = scalar_lea.vmem %s3517_s1, 12288  ;;  %s3301_s21 = smov [#allocation2]  }
  0x74   : > { %p3198_p10 = scmp.ne.s32.totalorder %s3517_s1, %s3197_s16  ;;  %s3202_s14 = sshll.u32 %s3301_s21, 4  ;;  %s3203_s14 = int_to_ptr.vmem [resolvable:$false] %s3202_s14 }
  0x75   : > { %s3204_s19 = scalar_lea.vmem %s3203_s14, 24576  ;;  %p3205_p12 = scmp.lt.s32.totalorder %s3517_s1, %s3203_s14 }
  0x76   : > { %p3200_p3 = pnand %p3198_p10, %p3184_p9  ;;  %p3206_p2 = scmp.lt.s32.totalorder %s3204_s19, %s3197_s16 }
  0x78   : > { %p3201_p7 = pneg %p3200_p3  ;;  %p3207_p1 = por %p3206_p2, %p3205_p12 }
  0x7a   : > { %p3208_p4 = pnand %p3207_p1, %p3201_p7 }
  0x7c   : > { %3211 = shalt.err (!%p3208_p4)
}
  0x7d   : > { %s3302_s12 = smov 768   ;;  %s3303_s20 = smov 48  }
  0x7e   : > { %2981 = dma.hbm_to_vmem [thread:$0]  (!%p3513_p11), %s3511_s15, 12288, %s3517_s1, %s3519_s24, %s3302_s12, %s3302_s12, %s3303_s20  }
  0x7f   : > { %p3923_p9 = scmp.ne.s32.totalorder %s3916_s13, 0 }
  0x80   : > { %s3550_s25 = sand.u32 (!%p3923_p9), 1, %s3282_s28   ;;  %p3924_p0 = scmp.ne.s32.totalorder (!%p3923_p9), %s3913_s11, 0 }
  0x81   : > { %324 = sbr.rel (%p3923_p9) target bundleno = 981 (0x3d5), region = 48  ;;  %s327_s10 = scalar_lea.sflag (!%p3923_p9), [#allocation3], %s3550_s25 }
  0x82   : > { %s2943_s26 = smul.u32 (!%p3923_p9), 768, %s3550_s25 }
  0x84   : > { %s3554_s16 = scalar_lea.vmem (!%p3923_p9), [#allocation2], %s2943_s26 }
  0x88   : > { %3257 = dma.done.wait (%p3924_p0), %s327_s10, 12288  }
  0x89   : > { %3259 = vsyncadd (%p3924_p0), %s327_s10, 4294955008  ;;  %p3925_p11 = scmp.eq.s32.totalorder %s3381_s9, 0 }
  0x8b   : > { %3261 = dma.done.wait (%p3925_p11), [#allocation6], 8192   ;;  %p3926_p8 = pmov %p3925_p11 }
  0x8d   : > { %3263 = vsyncadd (%p3926_p8), [#allocation6], 4294959104  ;;  %p3927_p13 = pmov %p3926_p8 }
  0x8e   : > { %p3928_p6 = pmov %p3926_p8 }
  0x8f   : > { %3265 = dma.done.wait (%p3927_p13), [#allocation9], 6144  }
  0x90   : > { %3267 = vsyncadd (%p3928_p6), [#allocation9], 4294961152  ;;  %v3050_v0 = vld [vmem:[#allocation5 + $0x40] sm:$0xff]   ;;  %v3054_v4 = vld [vmem:[#allocation5 + $0x48] sm:$0xff]   ;;  %s2239_s1 = sshll.u32 %s3550_s25, 7  ;;  %s2380_s12 = sshll.u32 %s3381_s9, 11 }
  0x91   : > { %v3051_v1 = vld [vmem:[#allocation5] sm:$0xff]   ;;  %2477 = vmatprep.subr.bf16.mxu0 %v3050_v0  ;;  %v3055_v5 = vld [vmem:[#allocation5 + $0x8] sm:$0xff]   ;;  %v3058_v8 = vld [vmem:[#allocation5 + $0x50] sm:$0xff]   ;;  %s3777_s14 = scalar_lea.vmem [#allocation10], %s2239_s1  ;;  %s3780_s19 = scalar_lea.vmem [#allocation11], %s2239_s1 }
  0x92   : > { %v3052_v2 = vld [vmem:[#allocation5 + $0xc0] sm:$0xff]   ;;  %2478 = vmatpush3.bf16.msra.mxu0 %v3051_v1  ;;  %v3056_v6 = vld [vmem:[#allocation5 + $0xc8] sm:$0xff]   ;;  %v3059_v9 = vld [vmem:[#allocation5 + $0x10] sm:$0xff]   ;;  %s2047_s20 = sshll.u32 %s3777_s14, 4  ;;  %s2029_s11 = scalar_lea.sflag [#allocation4], %s3550_s25  ;;  %s3831_s20 = int_to_ptr.vmem [resolvable:$true] %s2047_s20 }
  0x93   : > { %v3053_v3 = vld [vmem:[#allocation5 + $0x80] sm:$0xff]   ;;  %2541 = vmatprep.subr.bf16.mxu1 %v3052_v2  ;;  %2479 = vmatprep.subr.bf16.mxu0 %v3054_v4  ;;  %v3057_v7 = vld [vmem:[#allocation5 + $0x88] sm:$0xff]   ;;  %v3060_v10 = vld [vmem:[#allocation5 + $0xd0] sm:$0xff]   ;;  %s3212_s13 = scalar_lea.vmem %s3831_s20, 2048  ;;  %s3305_s15 = smov [#allocation10]  }
  0x94   : > { %2542 = vmatpush3.bf16.msra.mxu1 %v3053_v3  ;;  %v3061_v11 = vld [vmem:[#allocation5 + $0x90] sm:$0xff]   ;;  %v3062_v12 = vld [vmem:[#allocation5 + $0x58] sm:$0xff]   ;;  %v3066_v16 = vld [vmem:[#allocation5 + $0x60] sm:$0xff]   ;;  %p3213_p10 = scmp.ne.s32.totalorder %s3831_s20, %s3212_s13  ;;  %s3216_s18 = sshll.u32 %s3305_s15, 4  ;;  %s3217_s18 = int_to_ptr.vmem [resolvable:$false] %s3216_s18 }
  0x95   : > { %2543 = vmatprep.subr.bf16.mxu1 %v3056_v6  ;;  %v3063_v13 = vld [vmem:[#allocation5 + $0x18] sm:$0xff]   ;;  %v3067_v17 = vld [vmem:[#allocation5 + $0x20] sm:$0xff]   ;;  %v3070_v20 = vld [vmem:[#allocation5 + $0x68] sm:$0xff]   ;;  %s3218_s1 = scalar_lea.vmem %s3217_s18, 4096  ;;  %p3219_p12 = scmp.lt.s32.totalorder %s3831_s20, %s3217_s18 }
  0x96   : > { %2480 = vmatpush3.bf16.msra.mxu0 %v3055_v5  ;;  %v3064_v14 = vld [vmem:[#allocation5 + $0xd8] sm:$0xff]   ;;  %v3068_v18 = vld [vmem:[#allocation5 + $0xe0] sm:$0xff]   ;;  %v3071_v21 = vld [vmem:[#allocation5 + $0x28] sm:$0xff]   ;;  %p3214_p3 = pnand %p3213_p10, %p3502_p5  ;;  %p3220_p2 = scmp.lt.s32.totalorder %s3218_s1, %s3212_s13 }
  0x97   : > { %2481 = vmatprep.subr.bf16.mxu0 %v3058_v8  ;;  %v3065_v15 = vld [vmem:[#allocation5 + $0x98] sm:$0xff]   ;;  %v3069_v19 = vld [vmem:[#allocation5 + $0xa0] sm:$0xff]   ;;  %v3072_v22 = vld [vmem:[#allocation5 + $0xe8] sm:$0xff]  }
  0x98   : > { %2544 = vmatpush3.bf16.msra.mxu1 %v3057_v7  ;;  %v3073_v23 = vld [vmem:[#allocation5 + $0xa8] sm:$0xff]   ;;  %v3074_v24 = vld [vmem:[#allocation5 + $0x70] sm:$0xff]   ;;  %v3078_v28 = vld [vmem:[#allocation5 + $0x78] sm:$0xff]   ;;  %p3215_p7 = pneg %p3214_p3  ;;  %p3221_p1 = por %p3220_p2, %p3219_p12 }
  0x99   : > { %2545 = vmatprep.subr.bf16.mxu1 %v3060_v10  ;;  %v3075_v25 = vld [vmem:[#allocation5 + $0x30] sm:$0xff]   ;;  %v3079_v29 = vld [vmem:[#allocation5 + $0x38] sm:$0xff]   ;;  %v385_v31 = vld [vmem:[%s3554_s16 + $0x8] sm:$0xff] }
  0x9a   : > { %2482 = vmatpush3.bf16.msra.mxu0 %v3059_v9  ;;  %v3076_v26 = vld [vmem:[#allocation5 + $0xf0] sm:$0xff]   ;;  %v3080_v30 = vld [vmem:[#allocation5 + $0xf8] sm:$0xff]   ;;  %v384_v35 = vld [vmem:[%s3554_s16] sm:$0xff]  ;;  %p3222_p4 = pnand %p3221_p1, %p3215_p7 }
  0x9b   : > { %2483 = vmatprep.subr.bf16.mxu0 %v3062_v12  ;;  %v3077_v27 = vld [vmem:[#allocation5 + $0xb0] sm:$0xff]   ;;  %v391_v32 = vld [vmem:[%s3554_s16 + $0x38] sm:$0xff]  ;;  %v3082_v38 = vld [vmem:[#allocation5 + $0x140] sm:$0xff]  }
  0x9c   : > { %2546 = vmatpush3.bf16.msra.mxu1 %v3061_v11  ;;  %v481_v33 = vpack.c.bf16 %v391_v32, %v385_v31  ;;  %v3081_v34 = vld [vmem:[#allocation5 + $0xb8] sm:$0xff]   ;;  %v390_v36 = vld [vmem:[%s3554_s16 + $0x30] sm:$0xff]  ;;  %v393_v40 = vld [vmem:[%s3554_s16 + $0x48] sm:$0xff] }
  0x9d   : > { %2547 = vmatprep.subr.bf16.mxu1 %v3064_v14  ;;  %v480_v37 = vpack.c.bf16 %v390_v36, %v384_v35  ;;  %v387_v39 = vld [vmem:[%s3554_s16 + $0x18] sm:$0xff]  ;;  %v3083_v42 = vld [vmem:[#allocation5 + $0x100] sm:$0xff]   ;;  %v386_v43 = vld [vmem:[%s3554_s16 + $0x10] sm:$0xff] }
  0x9e   : > { %2484 = vmatpush3.bf16.msra.mxu0 %v3063_v13  ;;  %951 = vmatprep.mubr.bf16.mxu0 %v481_v33  ;;  %v483_v41 = vpack.c.bf16 %v393_v40, %v387_v39  ;;  %v392_v44 = vld [vmem:[%s3554_s16 + $0x40] sm:$0xff]  ;;  %v397_v45 = vld [vmem:[%s3554_s16 + $0x68] sm:$0xff]  ;;  %v403_v47 = vld [vmem:[%s3554_s16 + $0x98] sm:$0xff] }
  0x9f   : > { %2485 = vmatprep.subr.bf16.mxu0 %v3066_v16  ;;  %v482_v46 = vpack.c.bf16 %v392_v44, %v386_v43  ;;  %v396_v48 = vld [vmem:[%s3554_s16 + $0x60] sm:$0xff]  ;;  %v402_v49 = vld [vmem:[%s3554_s16 + $0x90] sm:$0xff]  ;;  %v487_v50 = vpack.c.bf16 %v403_v47, %v397_v45  ;;  %v3084_v51 = vld [vmem:[#allocation5 + $0x148] sm:$0xff]  }
  0xa0   : > { %2548 = vmatpush3.bf16.msra.mxu1 %v3065_v15  ;;  %1048 = vmatprep.mubr.bf16.mxu1 %v483_v41  ;;  %v399_v52 = vld [vmem:[%s3554_s16 + $0x78] sm:$0xff]  ;;  %v405_v53 = vld [vmem:[%s3554_s16 + $0xa8] sm:$0xff]  ;;  %v486_v54 = vpack.c.bf16 %v402_v49, %v396_v48  ;;  %v398_v57 = vld [vmem:[%s3554_s16 + $0x70] sm:$0xff] }
  0xa1   : > { %2549 = vmatprep.subr.bf16.mxu1 %v3068_v18  ;;  %v489_v55 = vpack.c.bf16 %v405_v53, %v399_v52  ;;  %v3085_v56 = vld [vmem:[#allocation5 + $0x108] sm:$0xff]   ;;  %v404_v58 = vld [vmem:[%s3554_s16 + $0xa0] sm:$0xff]  ;;  %v415_v60 = vld [vmem:[%s3554_s16 + $0xf8] sm:$0xff] }
  0xa2   : > { %2486 = vmatpush3.bf16.msra.mxu0 %v3067_v17  ;;  %v409_v59 = vld [vmem:[%s3554_s16 + $0xc8] sm:$0xff]  ;;  %v488_v62 = vpack.c.bf16 %v404_v58, %v398_v57  ;;  %v3086_v63 = vld [vmem:[#allocation5 + $0x150] sm:$0xff]   ;;  %v411_v0 = vld [vmem:[%s3554_s16 + $0xd8] sm:$0xff] }
  0xa3   : > { %2487 = vmatprep.subr.bf16.mxu0 %v3070_v20  ;;  %v493_v61 = vpack.c.bf16 %v415_v60, %v409_v59  ;;  %v417_v1 = vld [vmem:[%s3554_s16 + $0x108] sm:$0xff]  ;;  %v408_v2 = vld [vmem:[%s3554_s16 + $0xc0] sm:$0xff]  ;;  %v414_v3 = vld [vmem:[%s3554_s16 + $0xf0] sm:$0xff] }
  0xa4   : > { %2550 = vmatpush3.bf16.msra.mxu1 %v3069_v19  ;;  %v495_v4 = vpack.c.bf16 %v417_v1, %v411_v0  ;;  %v3087_v5 = vld [vmem:[#allocation5 + $0x110] sm:$0xff]   ;;  %v421_v7 = vld [vmem:[%s3554_s16 + $0x128] sm:$0xff]  ;;  %v427_v8 = vld [vmem:[%s3554_s16 + $0x158] sm:$0xff]  ;;  %v492_v10 = vpack.c.bf16 %v414_v3, %v408_v2 }
  0xa5   : > { %2551 = vmatprep.subr.bf16.mxu1 %v3072_v22  ;;  %v410_v6 = vld [vmem:[%s3554_s16 + $0xd0] sm:$0xff]  ;;  %v416_v9 = vld [vmem:[%s3554_s16 + $0x100] sm:$0xff]  ;;  %v3088_v11 = vld [vmem:[#allocation5 + $0x158] sm:$0xff]   ;;  %v499_v14 = vpack.c.bf16 %v427_v8, %v421_v7 }
  0xa6   : > { %2488 = vmatpush3.bf16.msra.mxu0 %v3071_v21  ;;  %v423_v12 = vld [vmem:[%s3554_s16 + $0x138] sm:$0xff]  ;;  %v429_v13 = vld [vmem:[%s3554_s16 + $0x168] sm:$0xff]  ;;  %v494_v16 = vpack.c.bf16 %v416_v9, %v410_v6  ;;  %v420_v17 = vld [vmem:[%s3554_s16 + $0x120] sm:$0xff] }
  0xa7   : > { %2489 = vmatprep.subr.bf16.mxu0 %v3074_v24  ;;  %v3089_v15 = vld [vmem:[#allocation5 + $0x118] sm:$0xff]   ;;  %v501_v18 = vpack.c.bf16 %v429_v13, %v423_v12  ;;  %v3090_v19 = vld [vmem:[#allocation5 + $0x160] sm:$0xff]   ;;  %v426_v20 = vld [vmem:[%s3554_s16 + $0x150] sm:$0xff] }
  0xa8   : > { %2552 = vmatpush3.bf16.msra.mxu1 %v3073_v23  ;;  %v433_v21 = vld [vmem:[%s3554_s16 + $0x188] sm:$0xff]  ;;  %v439_v22 = vld [vmem:[%s3554_s16 + $0x1b8] sm:$0xff]  ;;  %v3091_v23 = vld [vmem:[#allocation5 + $0x120] sm:$0xff]  }
  0xa9   : > { %2553 = vmatprep.subr.bf16.mxu1 %v3076_v26  ;;  %v422_v24 = vld [vmem:[%s3554_s16 + $0x130] sm:$0xff]  ;;  %v428_v26 = vld [vmem:[%s3554_s16 + $0x160] sm:$0xff]  ;;  %v3093_v32 = vld [vmem:[#allocation5 + $0x128] sm:$0xff]  }
  0xaa   : > { %2490 = vmatpush3.bf16.msra.mxu0 %v3075_v25  ;;  %v498_v25 = vpack.c.bf16 %v426_v20, %v420_v17  ;;  %v500_v31 = vpack.c.bf16 %v428_v26, %v422_v24  ;;  %v432_v33 = vld [vmem:[%s3554_s16 + $0x180] sm:$0xff]  ;;  %v438_v35 = vld [vmem:[%s3554_s16 + $0x1b0] sm:$0xff]  ;;  %v445_v36 = vld [vmem:[%s3554_s16 + $0x1e8] sm:$0xff] }
  0xab   : > { %2491 = vmatprep.subr.bf16.mxu0 %v3078_v28  ;;  %v505_v28 = vpack.c.bf16 %v439_v22, %v433_v21  ;;  %v3095_v39 = vld [vmem:[#allocation5 + $0x130] sm:$0xff]   ;;  %v504_v40 = vpack.c.bf16 %v438_v35, %v432_v33  ;;  %v447_v44 = vld [vmem:[%s3554_s16 + $0x1f8] sm:$0xff]  ;;  %v453_v45 = vld [vmem:[%s3554_s16 + $0x228] sm:$0xff] }
  0xac   : > { %2554 = vmatpush3.bf16.msra.mxu1 %v3077_v27  ;;  %v435_v27 = vld [vmem:[%s3554_s16 + $0x198] sm:$0xff]  ;;  %v434_v41 = vld [vmem:[%s3554_s16 + $0x190] sm:$0xff]  ;;  %v513_v48 = vpack.c.bf16 %v453_v45, %v447_v44  ;;  %v457_v52 = vld [vmem:[%s3554_s16 + $0x248] sm:$0xff] }
  0xad   : > { %2555 = vmatprep.subr.bf16.mxu1 %v3080_v30  ;;  %v3092_v30 = vld [vmem:[#allocation5 + $0x168] sm:$0xff]   ;;  %v3097_v49 = vld [vmem:[#allocation5 + $0x138] sm:$0xff]   ;;  %v458_v3 = vld [vmem:[%s3554_s16 + $0x250] sm:$0xff] }
  0xae   : > { %2492 = vmatpush3.bf16.msra.mxu0 %v3079_v29  ;;  %v441_v29 = vld [vmem:[%s3554_s16 + $0x1c8] sm:$0xff]  ;;  %v463_v53 = vld [vmem:[%s3554_s16 + $0x278] sm:$0xff]  ;;  %v394_v20 = vld [vmem:[%s3554_s16 + $0x50] sm:$0xff] }
  0xaf   : > { %2605 = vmatprep.subr.bf16.mxu0 %v3082_v38  ;;  %v3094_v38 = vld [vmem:[#allocation5 + $0x170] sm:$0xff]   ;;  %v517_v57 = vpack.c.bf16 %v463_v53, %v457_v52  ;;  %v459_v58 = vld [vmem:[%s3554_s16 + $0x258] sm:$0xff]  ;;  %v465_v59 = vld [vmem:[%s3554_s16 + $0x288] sm:$0xff] }
  0xb0   : > { %2556 = vmatpush3.bf16.msra.mxu1 %v3081_v34  ;;  %v507_v34 = vpack.c.bf16 %v441_v29, %v435_v27  ;;  %v469_v0 = vld [vmem:[%s3554_s16 + $0x2a8] sm:$0xff]  ;;  %v475_v1 = vld [vmem:[%s3554_s16 + $0x2d8] sm:$0xff]  ;;  %v406_v26 = vld [vmem:[%s3554_s16 + $0xb0] sm:$0xff] }
  0xb1   : > { %952 = vmatmul.mubr.bf16.vlgmr.msra.gmra.mrb[0].mxu0 %v480_v37  ;;  %v451_v37 = vld [vmem:[%s3554_s16 + $0x218] sm:$0xff]  ;;  %v477_v7 = vld [vmem:[%s3554_s16 + $0x2e8] sm:$0xff]  ;;  %v442_v44 = vld [vmem:[%s3554_s16 + $0x1d0] sm:$0xff] }
  0xb2   : > { %2606 = vmatpush3.bf16.msra.mxu0 %v3083_v42  ;;  %959 = vmatprep.mubr.bf16.mxu0 %v487_v50  ;;  %v440_v42 = vld [vmem:[%s3554_s16 + $0x1c0] sm:$0xff]  ;;  %v511_v43 = vpack.c.bf16 %v451_v37, %v445_v36  ;;  %v471_v6 = vld [vmem:[%s3554_s16 + $0x2b8] sm:$0xff]  ;;  %v389_v12 = vld [vmem:[%s3554_s16 + $0x28] sm:$0xff] }
  0xb3   : > { %1049 = vmatmul.mubr.bf16.vlgmr.msra.gmra.mrb[0].mxu1 %v482_v46  ;;  %2607 = vmatprep.subr.bf16.mxu0 %v3084_v51  ;;  %v3096_v46 = vld [vmem:[#allocation5 + $0x178] sm:$0xff]   ;;  %v506_v47 = vpack.c.bf16 %v440_v42, %v434_v41  ;;  %v444_v50 = vld [vmem:[%s3554_s16 + $0x1e0] sm:$0xff]  ;;  %v450_v51 = vld [vmem:[%s3554_s16 + $0x210] sm:$0xff]  ;;  %v525_v9 = vpack.c.bf16 %v477_v7, %v471_v6 }
  0xb4   : > { %1056 = vmatprep.mubr.bf16.mxu1 %v489_v55  ;;  %v446_v55 = vld [vmem:[%s3554_s16 + $0x1f0] sm:$0xff]  ;;  %v395_v13 = vld [vmem:[%s3554_s16 + $0x58] sm:$0xff]  ;;  %v401_v21 = vld [vmem:[%s3554_s16 + $0x88] sm:$0xff] }
  0xb5   : > { %v485_v17 = vpack.c.bf16 %v395_v13, %v389_v12  ;;  %v407_v22 = vld [vmem:[%s3554_s16 + $0xb8] sm:$0xff]  ;;  %v413_v27 = vld [vmem:[%s3554_s16 + $0xe8] sm:$0xff]  ;;  %v424_v37 = vld [vmem:[%s3554_s16 + $0x140] sm:$0xff] }
  0xb6   : > { %2608 = vmatpush3.bf16.msra.mxu0 %v3085_v56  ;;  %v452_v56 = vld [vmem:[%s3554_s16 + $0x220] sm:$0xff]  ;;  %v491_v24 = vpack.c.bf16 %v407_v22, %v401_v21  ;;  %v425_v33 = vld [vmem:[%s3554_s16 + $0x148] sm:$0xff]  ;;  %v467_v52 = vld [vmem:[%s3554_s16 + $0x298] sm:$0xff] }
  0xb7   : > { %2609 = vmatprep.subr.bf16.mxu0 %v3086_v63  ;;  %v512_v60 = vpack.c.bf16 %v452_v56, %v446_v55  ;;  %v462_v63 = vld [vmem:[%s3554_s16 + $0x270] sm:$0xff]  ;;  %v449_v45 = vld [vmem:[%s3554_s16 + $0x208] sm:$0xff]  ;;  %v1258_v53 = vld [vmem:[#allocation7] sm:$0xff] }
  0xb8   : > { %v1263_v6 = vld [vmem:[#allocation7 + $0x28] sm:$0xff]  ;;  %v1266_v12 = vld [vmem:[#allocation7 + $0x40] sm:$0xff]  ;;  %v1272_v21 = vld [vmem:[#allocation7 + $0x70] sm:$0xff] }
  0xb9   : > { %960 = vmatmul.mubr.bf16.gmra.mrb[4].mxu0 %v486_v54  ;;  %v510_v54 = vpack.c.bf16 %v450_v51, %v444_v50  ;;  %v454_v50 = vld [vmem:[%s3554_s16 + $0x230] sm:$0xff]  ;;  %v461_v51 = vld [vmem:[%s3554_s16 + $0x268] sm:$0xff]  ;;  %v1273_v22 = vld [vmem:[#allocation7 + $0x78] sm:$0xff] }
  0xba   : > { %967 = vmatprep.mubr.bf16.mxu0 %v493_v61  ;;  %2610 = vmatpush3.bf16.msra.mxu0 %v3087_v5  ;;  %v519_v61 = vpack.c.bf16 %v465_v59, %v459_v58  ;;  %v523_v5 = vpack.c.bf16 %v475_v1, %v469_v0  ;;  %v460_v58 = vld [vmem:[%s3554_s16 + $0x260] sm:$0xff]  ;;  %v466_v59 = vld [vmem:[%s3554_s16 + $0x290] sm:$0xff]  ;;  %v1267_v13 = vld [vmem:[#allocation7 + $0x48] sm:$0xff] }
  0xbb   : > { %1057 = vmatmul.mubr.bf16.gmra.mrb[4].mxu1 %v488_v62  ;;  %2611 = vmatprep.subr.bf16.mxu0 %v3088_v11  ;;  %v456_v62 = vld [vmem:[%s3554_s16 + $0x240] sm:$0xff]  ;;  %v474_v11 = vld [vmem:[%s3554_s16 + $0x2d0] sm:$0xff]  ;;  %v520_v1 = vpack.c.bf16 %v466_v59, %v460_v58  ;;  %v1497_v58 = vld [vmem:[#allocation8 + $0xb8] sm:$0xff] }
  0xbc   : > { %1064 = vmatprep.mubr.bf16.mxu1 %v495_v4  ;;  %v516_v2 = vpack.c.bf16 %v462_v63, %v456_v62  ;;  %v464_v4 = vld [vmem:[%s3554_s16 + $0x280] sm:$0xff]  ;;  %v1260_v62 = vld [vmem:[#allocation7 + $0x10] sm:$0xff]  ;;  %v1261_v63 = vld [vmem:[#allocation7 + $0x18] sm:$0xff] }
  0xbd   : > { %v518_v8 = vpack.c.bf16 %v464_v4, %v458_v3  ;;  %v2849_v0 = vpack.c.bf16 %v1261_v63, %v1260_v62  ;;  %v472_v3 = vld [vmem:[%s3554_s16 + $0x2c0] sm:$0xff]  ;;  %v478_v4 = vld [vmem:[%s3554_s16 + $0x2f0] sm:$0xff] }
  0xbe   : > { %2612 = vmatpush3.bf16.msra.mxu0 %v3089_v15  ;;  %v470_v15 = vld [vmem:[%s3554_s16 + $0x2b0] sm:$0xff] }
  0xbf   : > { %2613 = vmatprep.subr.bf16.mxu0 %v3090_v19  ;;  %v388_v19 = vld [vmem:[%s3554_s16 + $0x20] sm:$0xff] }
  0xc1   : > { %968 = vmatmul.mubr.bf16.gmra.mrb[8].mxu0 %v492_v10  ;;  %v468_v10 = vld [vmem:[%s3554_s16 + $0x2a0] sm:$0xff] }
  0xc2   : > { %975 = vmatprep.mubr.bf16.mxu0 %v499_v14  ;;  %2614 = vmatpush3.bf16.msra.mxu0 %v3091_v23  ;;  %v522_v14 = vpack.c.bf16 %v474_v11, %v468_v10  ;;  %v484_v23 = vpack.c.bf16 %v394_v20, %v388_v19  ;;  %v1265_v10 = vld [vmem:[#allocation7 + $0x38] sm:$0xff]  ;;  %v1271_v19 = vld [vmem:[#allocation7 + $0x68] sm:$0xff] }
  0xc3   : > { %1065 = vmatmul.mubr.bf16.gmra.mrb[8].mxu1 %v494_v16  ;;  %2615 = vmatprep.subr.bf16.mxu0 %v3092_v30  ;;  %v476_v16 = vld [vmem:[%s3554_s16 + $0x2e0] sm:$0xff] }
  0xc4   : > { %1072 = vmatprep.mubr.bf16.mxu1 %v501_v18  ;;  %v524_v18 = vpack.c.bf16 %v476_v16, %v470_v15  ;;  %v1268_v15 = vld [vmem:[#allocation7 + $0x50] sm:$0xff]  ;;  %v1269_v16 = vld [vmem:[#allocation7 + $0x58] sm:$0xff] }
  0xc6   : > { %2616 = vmatpush3.bf16.msra.mxu0 %v3093_v32  ;;  %v418_v32 = vld [vmem:[%s3554_s16 + $0x110] sm:$0xff] }
  0xc7   : > { %2617 = vmatprep.subr.bf16.mxu0 %v3094_v38  ;;  %v430_v38 = vld [vmem:[%s3554_s16 + $0x170] sm:$0xff] }
  0xc8   : > { %v502_v41 = vpack.c.bf16 %v430_v38, %v424_v37  ;;  %v1479_v38 = vld [vmem:[#allocation8 + $0x28] sm:$0xff] }
  0xc9   : > { %976 = vmatmul.mubr.bf16.gmra.mrb[12].mxu0 %v498_v25  ;;  %v400_v25 = vld [vmem:[%s3554_s16 + $0x80] sm:$0xff] }
  0xca   : > { %983 = vmatprep.mubr.bf16.mxu0 %v505_v28  ;;  %2618 = vmatpush3.bf16.msra.mxu0 %v3095_v39  ;;  %v419_v28 = vld [vmem:[%s3554_s16 + $0x118] sm:$0xff]  ;;  %v490_v29 = vpack.c.bf16 %v406_v26, %v400_v25  ;;  %v437_v39 = vld [vmem:[%s3554_s16 + $0x1a8] sm:$0xff]  ;;  %v3667_v25 = vld [vmem:[%s3901_s2] ss:$0 sm:$0xff] }
  0xcb   : > { %1073 = vmatmul.mubr.bf16.gmra.mrb[12].mxu1 %v500_v31  ;;  %2619 = vmatprep.subr.bf16.mxu0 %v3096_v46  ;;  %v497_v30 = vpack.c.bf16 %v419_v28, %v413_v27  ;;  %v412_v31 = vld [vmem:[%s3554_s16 + $0xe0] sm:$0xff]  ;;  %v455_v46 = vld [vmem:[%s3554_s16 + $0x238] sm:$0xff] }
  0xcc   : > { %1080 = vmatprep.mubr.bf16.mxu1 %v507_v34  ;;  %v431_v34 = vld [vmem:[%s3554_s16 + $0x178] sm:$0xff]  ;;  %v496_v35 = vpack.c.bf16 %v418_v32, %v412_v31  ;;  %v1475_v31 = vld [vmem:[#allocation8 + $0x8] sm:$0xff]  ;;  %v1478_v32 = vld [vmem:[#allocation8 + $0x20] sm:$0xff] }
  0xcd   : > { %v503_v36 = vpack.c.bf16 %v431_v34, %v425_v33  ;;  %v1476_v33 = vld [vmem:[#allocation8 + $0x10] sm:$0xff]  ;;  %v2877_v37 = vpack.c.bf16 %v1478_v32, %v1475_v31 }
  0xce   : > { %2620 = vmatpush3.bf16.msra.mxu0 %v3097_v49  ;;  %v448_v49 = vld [vmem:[%s3554_s16 + $0x200] sm:$0xff] }
  0xcf   : > { %v514_v56 = vpack.c.bf16 %v454_v50, %v448_v49  ;;  %v1488_v50 = vld [vmem:[#allocation8 + $0x70] sm:$0xff] }
  0xd1   : > { %984 = vmatmul.mubr.bf16.gmra.mrb[16].mxu0 %v504_v40  ;;  %v443_v40 = vld [vmem:[%s3554_s16 + $0x1d8] sm:$0xff] }
  0xd2   : > { %991 = vmatprep.mubr.bf16.mxu0 %v511_v43  ;;  %v509_v42 = vpack.c.bf16 %v443_v40, %v437_v39  ;;  %v436_v43 = vld [vmem:[%s3554_s16 + $0x1a0] sm:$0xff] }
  0xd3   : > { %1081 = vmatmul.mubr.bf16.gmra.mrb[16].mxu1 %v506_v47  ;;  %v508_v47 = vpack.c.bf16 %v442_v44, %v436_v43  ;;  %v1482_v44 = vld [vmem:[#allocation8 + $0x40] sm:$0xff] }
  0xd4   : > { %1088 = vmatprep.mubr.bf16.mxu1 %v513_v48  ;;  %v515_v48 = vpack.c.bf16 %v455_v46, %v449_v45  ;;  %v1485_v45 = vld [vmem:[#allocation8 + $0x58] sm:$0xff] }
  0xd9   : > { %992 = vmatmul.mubr.bf16.gmra.mrb[20].mxu0 %v510_v54  ;;  %v1259_v54 = vld [vmem:[#allocation7 + $0x8] sm:$0xff] }
  0xda   : > { %999 = vmatprep.mubr.bf16.mxu0 %v517_v57  ;;  %v2845_v55 = vpack.c.bf16 %v1259_v54, %v1258_v53  ;;  %v521_v57 = vpack.c.bf16 %v467_v52, %v461_v51  ;;  %v1491_v51 = vld [vmem:[#allocation8 + $0x88] sm:$0xff] }
  0xdb   : > { %1089 = vmatmul.mubr.bf16.gmra.mrb[20].mxu1 %v512_v60  ;;  %v473_v60 = vld [vmem:[%s3554_s16 + $0x2c8] sm:$0xff]  ;;  %v2917_v54 = vpack.c.bf16 %v1491_v51, %v1488_v50 }
  0xdc   : > { %1096 = vmatprep.mubr.bf16.mxu1 %v519_v61  ;;  %2846 = vmatprep.subr.bf16.mxu1 %v2845_v55  ;;  %v479_v61 = vld [vmem:[%s3554_s16 + $0x2f8] sm:$0xff]  ;;  %s3829_s16 = scalar_lea.hbm %s3906_s7, %s2380_s12 }
  0xdd   : > { %2848 = vmatpush3.bf16.msra.mxu1 %v2845_v55 }
  0xde   : > { %2850 = vmatprep.subr.bf16.mxu1 %v2849_v0 }
  0xe1   : > { %1000 = vmatmul.mubr.bf16.gmra.mrb[24].mxu0 %v516_v2  ;;  %v527_v2 = vpack.c.bf16 %v479_v61, %v473_v60  ;;  %2852 = vmatpush3.bf16.msra.mxu1 %v2849_v0 }
  0xe2   : > { %1007 = vmatprep.mubr.bf16.mxu0 %v523_v5  ;;  %v1262_v5 = vld [vmem:[#allocation7 + $0x20] sm:$0xff] }
  0xe3   : > { %1097 = vmatmul.mubr.bf16.gmra.mrb[24].mxu1 %v518_v8  ;;  %v2853_v7 = vpack.c.bf16 %v1263_v6, %v1262_v5  ;;  %v526_v8 = vpack.c.bf16 %v478_v4, %v472_v3  ;;  %v1500_v5 = vld [vmem:[#allocation8 + $0xd0] sm:$0xff]  ;;  %v1503_v6 = vld [vmem:[#allocation8 + $0xe8] sm:$0xff] }
  0xe4   : > { %1104 = vmatprep.mubr.bf16.mxu1 %v525_v9  ;;  %v1264_v9 = vld [vmem:[#allocation7 + $0x30] sm:$0xff] }
  0xe5   : > { %2854 = vmatprep.subr.bf16.mxu1 %v2853_v7  ;;  %v2857_v11 = vpack.c.bf16 %v1265_v10, %v1264_v9 }
  0xe6   : > { %2856 = vmatpush3.bf16.msra.mxu1 %v2853_v7 }
  0xe7   : > { %2858 = vmatprep.subr.bf16.mxu1 %v2857_v11 }
  0xe9   : > { %1008 = vmatmul.mubr.bf16.gmra.mrb[28].mxu0 %v522_v14  ;;  %v2861_v14 = vpack.c.bf16 %v1267_v13, %v1266_v12  ;;  %v2925_v12 = vpack.c.bf16 %v1503_v6, %v1500_v5 }
  0xea   : > { %1145 = vmatprep.mubr.bf16.mxu0 %v485_v17  ;;  %2860 = vmatpush3.bf16.msra.mxu1 %v2857_v11  ;;  %v2865_v17 = vpack.c.bf16 %v1269_v16, %v1268_v15  ;;  %v1506_v15 = vld [vmem:[#allocation8 + $0x100] sm:$0xff]  ;;  %v1509_v16 = vld [vmem:[#allocation8 + $0x118] sm:$0xff] }
  0xeb   : > { %1105 = vmatmul.mubr.bf16.gmra.mrb[28].mxu1 %v524_v18  ;;  %2862 = vmatprep.subr.bf16.mxu1 %v2861_v14  ;;  %v1270_v18 = vld [vmem:[#allocation7 + $0x60] sm:$0xff] }
  0xec   : > { %v2869_v20 = vpack.c.bf16 %v1271_v19, %v1270_v18 }
  0xee   : > { %2864 = vmatpush3.bf16.msra.mxu1 %v2861_v14 }
  0xef   : > { %2866 = vmatprep.subr.bf16.mxu1 %v2865_v17 }
  0xf1   : > { %1146 = vmatmul.mubr.bf16.vlgmr.msra.gmra.mrb[32].mxu0 %v484_v23  ;;  %v2873_v23 = vpack.c.bf16 %v1273_v22, %v1272_v21 }
  0xf2   : > { %1153 = vmatprep.mubr.bf16.mxu0 %v491_v24  ;;  %2868 = vmatpush3.bf16.msra.mxu1 %v2865_v17 }
  0xf3   : > { %2870 = vmatprep.subr.bf16.mxu1 %v2869_v20 }
  0xf6   : > { %2872 = vmatpush3.bf16.msra.mxu1 %v2869_v20 }
  0xf7   : > { %2874 = vmatprep.subr.bf16.mxu1 %v2873_v23 }
  0xf9   : > { %1154 = vmatmul.mubr.bf16.gmra.mrb[36].mxu0 %v490_v29 }
  0xfa   : > { %1161 = vmatprep.mubr.bf16.mxu0 %v497_v30  ;;  %2876 = vmatpush3.bf16.msra.mxu1 %v2873_v23 }
  0xfb   : > { %2878 = vmatprep.subr.bf16.mxu1 %v2877_v37 }
 0x101   : > { %1162 = vmatmul.mubr.bf16.gmra.mrb[40].mxu0 %v496_v35 }
 0x102   : > { %1169 = vmatprep.mubr.bf16.mxu0 %v503_v36 }
 0x109   : > { %1170 = vmatmul.mubr.bf16.gmra.mrb[44].mxu0 %v502_v41  ;;  %v2909_v41 = vpack.c.bf16 %v1479_v38, %v1476_v33 }
 0x10a   : > { %1177 = vmatprep.mubr.bf16.mxu0 %v509_v42 }
 0x10b   : > { %2910 = vmatprep.subr.bf16.mxu0 %v2909_v41 }
 0x10c   : > { %2912 = vmatpush3.bf16.msra.mxu0 %v2909_v41 }
 0x111   : > { %1178 = vmatmul.mubr.bf16.gmra.mrb[48].mxu0 %v508_v47 }
 0x112   : > { %1185 = vmatprep.mubr.bf16.mxu0 %v515_v48  ;;  %v2913_v48 = vpack.c.bf16 %v1485_v45, %v1482_v44 }
 0x114   : > { %2914 = vmatprep.subr.bf16.mxu0 %v2913_v48 }
 0x115   : > { %2916 = vmatpush3.bf16.msra.mxu0 %v2913_v48 }
 0x116   : > { %2918 = vmatprep.subr.bf16.mxu0 %v2917_v54 }
 0x119   : > { %1186 = vmatmul.mubr.bf16.gmra.mrb[52].mxu0 %v514_v56 }
 0x11a   : > { %1193 = vmatprep.mubr.bf16.mxu0 %v521_v57  ;;  %v1494_v57 = vld [vmem:[#allocation8 + $0xa0] sm:$0xff]  ;;  %2920 = vmatpush3.bf16.msra.mxu0 %v2917_v54 }
 0x121   : > { %1194 = vmatmul.mubr.bf16.gmra.mrb[56].mxu0 %v520_v1 }
 0x122   : > { %1201 = vmatprep.mubr.bf16.mxu0 %v527_v2  ;;  %v2921_v2 = vpack.c.bf16 %v1497_v58, %v1494_v57 }
 0x124   : > { %2922 = vmatprep.subr.bf16.mxu0 %v2921_v2 }
 0x125   : > { %2924 = vmatpush3.bf16.msra.mxu0 %v2921_v2 }
 0x126   : > { %2926 = vmatprep.subr.bf16.mxu0 %v2925_v12 }
 0x129   : > { %1202 = vmatmul.mubr.bf16.gmra.mrb[60].mxu0 %v526_v8 }
 0x12a   : > { %2928 = vmatpush3.bf16.msra.mxu0 %v2925_v12 }
 0x184   : > { %v2493_v24 = vpop.f32.mrb[0].mxu0 }
 0x185   : > { %v2494_v26 = vpop.f32.mrb[1].mxu0 }
 0x186   : > { %v2495_v27 = vadd.f32 %v2494_v26, %v2493_v24  ;;  %v2496_v28 = vpop.f32.mrb[2].mxu0  ;;  %v2557_v29 = vpop.f32.mrb[0].mxu1  ;;  %v2929_v24 = vpack.c.bf16 %v1509_v16, %v1506_v15 }
 0x187   : > { %v2497_v30 = vpop.f32.mrb[3].mxu0  ;;  %v2558_v36 = vpop.f32.mrb[1].mxu1 }
 0x188   : > { %v954_v34 = vadd.f32 %v2495_v27, %v3667_v25  ;;  %v2498_v35 = vadd.f32 %v2497_v30, %v2496_v28  ;;  %v2559_v39 = vadd.f32 %v2558_v36, %v2557_v29  ;;  %v2560_v40 = vpop.f32.mrb[2].mxu1  ;;  %2930 = vmatprep.subr.bf16.mxu0 %v2929_v24 }
 0x189   : > { %v2561_v43 = vpop.f32.mrb[3].mxu1  ;;  %2932 = vmatpush3.bf16.msra.mxu0 %v2929_v24 }
 0x18a   : > { %v957_v42 = vadd.f32 %v2498_v35, %v3667_v25  ;;  %v3671_v46 = vadd.f32 %v2559_v39, %v954_v34  ;;  %v2562_v47 = vadd.f32 %v2561_v43, %v2560_v40 }
 0x18c   : > { %v2499_v49 = vpop.f32.mrb[4].mxu0  ;;  %v3673_v52 = vadd.f32 %v2562_v47, %v957_v42 }
 0x18d   : > { %v2500_v53 = vpop.f32.mrb[5].mxu0 }
 0x18e   : > { %v2501_v55 = vadd.f32 %v2500_v53, %v2499_v49  ;;  %v2502_v56 = vpop.f32.mrb[6].mxu0  ;;  %v2563_v59 = vpop.f32.mrb[4].mxu1 }
 0x18f   : > { %v2503_v60 = vpop.f32.mrb[7].mxu0  ;;  %v2564_v63 = vpop.f32.mrb[5].mxu1 }
 0x190   : > { %v962_v61 = vadd.f32 %v2501_v55, %v3667_v25  ;;  %v2504_v62 = vadd.f32 %v2503_v60, %v2502_v56  ;;  %v2565_v0 = vadd.f32 %v2564_v63, %v2563_v59  ;;  %v2566_v1 = vpop.f32.mrb[6].mxu1 }
 0x191   : > { %v2567_v4 = vpop.f32.mrb[7].mxu1 }
 0x192   : > { %v965_v3 = vadd.f32 %v2504_v62, %v3667_v25  ;;  %v3677_v7 = vadd.f32 %v2565_v0, %v962_v61  ;;  %v2568_v8 = vadd.f32 %v2567_v4, %v2566_v1 }
 0x194   : > { %v2505_v9 = vpop.f32.mrb[8].mxu0  ;;  %v3679_v10 = vadd.f32 %v2568_v8, %v965_v3 }
 0x195   : > { %v2506_v11 = vpop.f32.mrb[9].mxu0 }
 0x196   : > { %v2507_v13 = vadd.f32 %v2506_v11, %v2505_v9  ;;  %v2508_v14 = vpop.f32.mrb[10].mxu0  ;;  %v2569_v17 = vpop.f32.mrb[8].mxu1 }
 0x197   : > { %v2509_v18 = vpop.f32.mrb[11].mxu0  ;;  %v2570_v21 = vpop.f32.mrb[9].mxu1 }
 0x198   : > { %v970_v19 = vadd.f32 %v2507_v13, %v3667_v25  ;;  %v2510_v20 = vadd.f32 %v2509_v18, %v2508_v14  ;;  %v2571_v22 = vadd.f32 %v2570_v21, %v2569_v17  ;;  %v2572_v23 = vpop.f32.mrb[10].mxu1 }
 0x199   : > { %v2573_v27 = vpop.f32.mrb[11].mxu1 }
 0x19a   : > { %v973_v26 = vadd.f32 %v2510_v20, %v3667_v25  ;;  %v3683_v28 = vadd.f32 %v2571_v22, %v970_v19  ;;  %v2574_v29 = vadd.f32 %v2573_v27, %v2572_v23 }
 0x19c   : > { %v2511_v30 = vpop.f32.mrb[12].mxu0  ;;  %v3685_v31 = vadd.f32 %v2574_v29, %v973_v26 }
 0x19d   : > { %v2512_v32 = vpop.f32.mrb[13].mxu0 }
 0x19e   : > { %v2513_v33 = vadd.f32 %v2512_v32, %v2511_v30  ;;  %v2514_v34 = vpop.f32.mrb[14].mxu0  ;;  %v2575_v35 = vpop.f32.mrb[12].mxu1 }
 0x19f   : > { %v2515_v36 = vpop.f32.mrb[15].mxu0  ;;  %v2576_v39 = vpop.f32.mrb[13].mxu1 }
 0x1a0   : > { %v978_v37 = vadd.f32 %v2513_v33, %v3667_v25  ;;  %v2516_v38 = vadd.f32 %v2515_v36, %v2514_v34  ;;  %v2577_v40 = vadd.f32 %v2576_v39, %v2575_v35  ;;  %v2578_v41 = vpop.f32.mrb[14].mxu1 }
 0x1a1   : > { %v2579_v43 = vpop.f32.mrb[15].mxu1 }
 0x1a2   : > { %v981_v42 = vadd.f32 %v2516_v38, %v3667_v25  ;;  %v3689_v44 = vadd.f32 %v2577_v40, %v978_v37  ;;  %v2580_v45 = vadd.f32 %v2579_v43, %v2578_v41 }
 0x1a4   : > { %v2517_v47 = vpop.f32.mrb[16].mxu0  ;;  %v3691_v48 = vadd.f32 %v2580_v45, %v981_v42 }
 0x1a5   : > { %v2518_v49 = vpop.f32.mrb[17].mxu0 }
 0x1a6   : > { %v2519_v50 = vadd.f32 %v2518_v49, %v2517_v47  ;;  %v2520_v51 = vpop.f32.mrb[18].mxu0  ;;  %v2581_v53 = vpop.f32.mrb[16].mxu1 }
 0x1a7   : > { %v2521_v54 = vpop.f32.mrb[19].mxu0  ;;  %v2582_v57 = vpop.f32.mrb[17].mxu1 }
 0x1a8   : > { %v986_v55 = vadd.f32 %v2519_v50, %v3667_v25  ;;  %v2522_v56 = vadd.f32 %v2521_v54, %v2520_v51  ;;  %v2583_v58 = vadd.f32 %v2582_v57, %v2581_v53  ;;  %v2584_v59 = vpop.f32.mrb[18].mxu1 }
 0x1a9   : > { %v2585_v61 = vpop.f32.mrb[19].mxu1 }
 0x1aa   : > { %v989_v60 = vadd.f32 %v2522_v56, %v3667_v25  ;;  %v3695_v62 = vadd.f32 %v2583_v58, %v986_v55  ;;  %v2586_v63 = vadd.f32 %v2585_v61, %v2584_v59 }
 0x1ac   : > { %v2523_v0 = vpop.f32.mrb[20].mxu0  ;;  %v3697_v1 = vadd.f32 %v2586_v63, %v989_v60 }
 0x1ad   : > { %v2524_v2 = vpop.f32.mrb[21].mxu0 }
 0x1ae   : > { %v2525_v3 = vadd.f32 %v2524_v2, %v2523_v0  ;;  %v2526_v4 = vpop.f32.mrb[22].mxu0  ;;  %v2587_v5 = vpop.f32.mrb[20].mxu1 }
 0x1af   : > { %v2527_v6 = vpop.f32.mrb[23].mxu0  ;;  %v2588_v11 = vpop.f32.mrb[21].mxu1 }
 0x1b0   : > { %v994_v8 = vadd.f32 %v2525_v3, %v3667_v25  ;;  %v2528_v9 = vadd.f32 %v2527_v6, %v2526_v4  ;;  %v2589_v12 = vadd.f32 %v2588_v11, %v2587_v5  ;;  %v2590_v13 = vpop.f32.mrb[22].mxu1  ;;  %v1474_v3 = vld [vmem:[#allocation8] sm:$0xff]  ;;  %v1477_v4 = vld [vmem:[#allocation8 + $0x18] sm:$0xff] }
 0x1b1   : > { %v2591_v15 = vpop.f32.mrb[23].mxu1  ;;  %v1481_v6 = vld [vmem:[#allocation8 + $0x38] sm:$0xff] }
 0x1b2   : > { %v997_v14 = vadd.f32 %v2528_v9, %v3667_v25  ;;  %v3701_v16 = vadd.f32 %v2589_v12, %v994_v8  ;;  %v2592_v17 = vadd.f32 %v2591_v15, %v2590_v13  ;;  %v1484_v8 = vld [vmem:[#allocation8 + $0x50] sm:$0xff]  ;;  %v2879_v13 = vpack.c.bf16 %v1477_v4, %v1474_v3  ;;  %v1505_v3 = vld [vmem:[#allocation8 + $0xf8] sm:$0xff] }
 0x1b3   : > { %v2881_v15 = vpack.c.bf16 %v1484_v8, %v1481_v6  ;;  %v1508_v4 = vld [vmem:[#allocation8 + $0x110] sm:$0xff] }
 0x1b4   : > { %v2529_v18 = vpop.f32.mrb[24].mxu0  ;;  %v3703_v19 = vadd.f32 %v2592_v17, %v997_v14  ;;  %v1480_v17 = vld [vmem:[#allocation8 + $0x30] sm:$0xff] }
 0x1b5   : > { %v2530_v20 = vpop.f32.mrb[25].mxu0 }
 0x1b6   : > { %v2531_v21 = vadd.f32 %v2530_v20, %v2529_v18  ;;  %v2532_v22 = vpop.f32.mrb[26].mxu0  ;;  %v2593_v23 = vpop.f32.mrb[24].mxu1  ;;  %v1483_v18 = vld [vmem:[#allocation8 + $0x48] sm:$0xff] }
 0x1b7   : > { %v2533_v24 = vpop.f32.mrb[27].mxu0  ;;  %v2594_v29 = vpop.f32.mrb[25].mxu1 }
 0x1b8   : > { %v1002_v26 = vadd.f32 %v2531_v21, %v3667_v25  ;;  %v2534_v27 = vadd.f32 %v2533_v24, %v2532_v22  ;;  %v2595_v30 = vadd.f32 %v2594_v29, %v2593_v23  ;;  %v2596_v32 = vpop.f32.mrb[26].mxu1  ;;  %v1487_v22 = vld [vmem:[#allocation8 + $0x68] sm:$0xff]  ;;  %v1490_v23 = vld [vmem:[#allocation8 + $0x80] sm:$0xff] }
 0x1b9   : > { %v2597_v34 = vpop.f32.mrb[27].mxu1  ;;  %v2885_v29 = vpack.c.bf16 %v1490_v23, %v1487_v22 }
 0x1ba   : > { %v1005_v33 = vadd.f32 %v2534_v27, %v3667_v25  ;;  %v3707_v35 = vadd.f32 %v2595_v30, %v1002_v26  ;;  %v2598_v36 = vadd.f32 %v2597_v34, %v2596_v32  ;;  %v2883_v27 = vpack.c.bf16 %v1483_v18, %v1480_v17  ;;  %v1486_v30 = vld [vmem:[#allocation8 + $0x60] sm:$0xff]  ;;  %v1489_v32 = vld [vmem:[#allocation8 + $0x78] sm:$0xff] }
 0x1bb   : > { %v1514_v17 = vld [vmem:[#allocation8 + $0x140] sm:$0xff] }
 0x1bc   : > { %v2535_v37 = vpop.f32.mrb[28].mxu0  ;;  %v3709_v38 = vadd.f32 %v2598_v36, %v1005_v33  ;;  %v1493_v36 = vld [vmem:[#allocation8 + $0x98] sm:$0xff] }
 0x1bd   : > { %v2536_v39 = vpop.f32.mrb[29].mxu0 }
 0x1be   : > { %v2537_v40 = vadd.f32 %v2536_v39, %v2535_v37  ;;  %v2538_v41 = vpop.f32.mrb[30].mxu0  ;;  %v2599_v42 = vpop.f32.mrb[28].mxu1  ;;  %v1496_v37 = vld [vmem:[#allocation8 + $0xb0] sm:$0xff] }
 0x1bf   : > { %v2539_v43 = vpop.f32.mrb[31].mxu0  ;;  %v2600_v49 = vpop.f32.mrb[29].mxu1 }
 0x1c0   : > { %v1010_v45 = vadd.f32 %v2537_v40, %v3667_v25  ;;  %v2540_v47 = vadd.f32 %v2539_v43, %v2538_v41  ;;  %v2601_v50 = vadd.f32 %v2600_v49, %v2599_v42  ;;  %v2602_v51 = vpop.f32.mrb[30].mxu1  ;;  %v2887_v42 = vpack.c.bf16 %v1489_v32, %v1486_v30 }
 0x1c1   : > { %v2603_v54 = vpop.f32.mrb[31].mxu1  ;;  %v2889_v43 = vpack.c.bf16 %v1496_v37, %v1493_v36 }
 0x1c2   : > { %v1013_v53 = vadd.f32 %v2540_v47, %v3667_v25  ;;  %v3713_v55 = vadd.f32 %v2601_v50, %v1010_v45  ;;  %v2604_v56 = vadd.f32 %v2603_v54, %v2602_v51  ;;  %v1492_v45 = vld [vmem:[#allocation8 + $0x90] sm:$0xff]  ;;  %v1495_v47 = vld [vmem:[#allocation8 + $0xa8] sm:$0xff] }
 0x1c4   : > { %v2621_v57 = vpop.f32.mrb[32].mxu0  ;;  %v3715_v58 = vadd.f32 %v2604_v56, %v1013_v53  ;;  %v1502_v53 = vld [vmem:[#allocation8 + $0xe0] sm:$0xff] }
 0x1c5   : > { %v2622_v59 = vpop.f32.mrb[33].mxu0 }
 0x1c6   : > { %v2623_v60 = vadd.f32 %v2622_v59, %v2621_v57  ;;  %v2624_v61 = vpop.f32.mrb[34].mxu0  ;;  %v2891_v59 = vpack.c.bf16 %v1495_v47, %v1492_v45 }
 0x1c7   : > { %v2625_v63 = vpop.f32.mrb[35].mxu0 }
 0x1c8   : > { %v1148_v0 = vadd.f32 %v2623_v60, %v3671_v46  ;;  %v2626_v2 = vadd.f32 %v2625_v63, %v2624_v61  ;;  %v1498_v61 = vld [vmem:[#allocation8 + $0xc0] sm:$0xff]  ;;  %v1501_v63 = vld [vmem:[#allocation8 + $0xd8] sm:$0xff] }
 0x1c9   : > { %v2895_v8 = vpack.c.bf16 %v1501_v63, %v1498_v61 }
 0x1ca   : > { %v1151_v5 = vadd.f32 %v2626_v2, %v3673_v52  ;;  %vm1210_vm0 = vcmp.gt.f32.partialorder %v1148_v0, 0.0  ;;  %v1226_v25 = vmul.f32 0.01, %v1148_v0 }
 0x1cc   : > { %vm1211_vm1 = vcmp.gt.f32.partialorder %v1151_v5, 0.0  ;;  %v1227_v9 = vmul.f32 0.01, %v1151_v5  ;;  %v2627_v11 = vpop.f32.mrb[36].mxu0  ;;  %v1242_v12 = vsel %vm1210_vm0, %v1148_v0, %v1226_v25 }
 0x1cd   : > { %v2628_v14 = vpop.f32.mrb[37].mxu0  ;;  %2765 = vmatprep.mubr.f32.mxu1 %v1242_v12  ;;  %v1507_v12 = vld [vmem:[#allocation8 + $0x108] sm:$0xff] }
 0x1ce   : > { %v2629_v46 = vadd.f32 %v2628_v14, %v2627_v11  ;;  %v2630_v20 = vpop.f32.mrb[38].mxu0  ;;  %v1243_v21 = vsel %vm1211_vm1, %v1151_v5, %v1227_v9  ;;  %v2897_v9 = vpack.c.bf16 %v1508_v4, %v1505_v3  ;;  %v1504_v11 = vld [vmem:[#allocation8 + $0xf0] sm:$0xff] }
 0x1cf   : > { %v2631_v52 = vpop.f32.mrb[39].mxu0  ;;  %2766 = vmatmul.mubr.f32.vlgmr.msra.gmra.mrb[32].mxu1 %v1243_v21  ;;  %v2899_v21 = vpack.c.bf16 %v1507_v12, %v1504_v11 }
 0x1d0   : > { %v1156_v24 = vadd.f32 %v2629_v46, %v3677_v7  ;;  %v2632_v26 = vadd.f32 %v2631_v52, %v2630_v20  ;;  %2880 = vmatpush1.bf16.msra.mxu1 %v2879_v13 }
 0x1d1   : > { %2882 = vmatprep.subr.bf16.mxu1 %v2881_v15 }
 0x1d2   : > { %v1159_v33 = vadd.f32 %v2632_v26, %v3679_v10  ;;  %vm1212_vm2 = vcmp.gt.f32.partialorder %v1156_v24, 0.0  ;;  %v1228_v34 = vmul.f32 0.01, %v1156_v24  ;;  %v1499_v10 = vld [vmem:[#allocation8 + $0xc8] sm:$0xff] }
 0x1d3   : > { %v2893_v60 = vpack.c.bf16 %v1502_v53, %v1499_v10 }
 0x1d4   : > { %v2633_v39 = vpop.f32.mrb[40].mxu0  ;;  %v1244_v40 = vsel %vm1212_vm2, %v1156_v24, %v1228_v34  ;;  %vm1213_vm3 = vcmp.gt.f32.partialorder %v1159_v33, 0.0  ;;  %v1229_v41 = vmul.f32 0.01, %v1159_v33  ;;  %2884 = vmatpush1.bf16.msra.mxu1 %v2883_v27 }
 0x1d5   : > { %v2634_v7 = vpop.f32.mrb[41].mxu0  ;;  %2768 = vmatprep.mubr.f32.mxu1 %v1244_v40  ;;  %2886 = vmatprep.subr.bf16.mxu1 %v2885_v29 }
 0x1d6   : > { %v2635_v49 = vadd.f32 %v2634_v7, %v2633_v39  ;;  %v2636_v50 = vpop.f32.mrb[42].mxu0  ;;  %v1245_v51 = vsel %vm1213_vm3, %v1159_v33, %v1229_v41 }
 0x1d7   : > { %v2637_v54 = vpop.f32.mrb[43].mxu0  ;;  %2769 = vmatmul.mubr.f32.gmra.mrb[34].mxu1 %v1245_v51 }
 0x1d8   : > { %v1164_v56 = vadd.f32 %v2635_v49, %v3683_v28  ;;  %v2638_v57 = vadd.f32 %v2637_v54, %v2636_v50  ;;  %2888 = vmatpush1.bf16.msra.mxu1 %v2887_v42 }
 0x1d9   : > { %2890 = vmatprep.subr.bf16.mxu1 %v2889_v43 }
 0x1da   : > { %v1167_v0 = vadd.f32 %v2638_v57, %v3685_v31  ;;  %vm1214_vm4 = vcmp.gt.f32.partialorder %v1164_v56, 0.0  ;;  %v1230_v2 = vmul.f32 0.01, %v1164_v56  ;;  %v1511_v31 = vld [vmem:[#allocation8 + $0x128] sm:$0xff] }
 0x1db   : > { %v2901_v22 = vpack.c.bf16 %v1514_v17, %v1511_v31  ;;  %v1512_v31 = vld [vmem:[#allocation8 + $0x130] sm:$0xff] }
 0x1dc   : > { %v2639_v5 = vpop.f32.mrb[44].mxu0  ;;  %v1246_v25 = vsel %vm1214_vm4, %v1164_v56, %v1230_v2  ;;  %vm1215_vm5 = vcmp.gt.f32.partialorder %v1167_v0, 0.0  ;;  %v1231_v6 = vmul.f32 0.01, %v1167_v0  ;;  %2892 = vmatpush1.bf16.msra.mxu1 %v2891_v59 }
 0x1dd   : > { %v2640_v28 = vpop.f32.mrb[45].mxu0  ;;  %2771 = vmatprep.mubr.f32.mxu1 %v1246_v25  ;;  %2894 = vmatprep.subr.bf16.mxu1 %v2893_v60 }
 0x1de   : > { %v2641_v13 = vadd.f32 %v2640_v28, %v2639_v5  ;;  %v2642_v14 = vpop.f32.mrb[46].mxu0  ;;  %v1247_v15 = vsel %vm1215_vm5, %v1167_v0, %v1231_v6 }
 0x1df   : > { %v2643_v18 = vpop.f32.mrb[47].mxu0  ;;  %2772 = vmatmul.mubr.f32.gmra.mrb[36].mxu1 %v1247_v15  ;;  %v1513_v15 = vld [vmem:[#allocation8 + $0x138] sm:$0xff] }
 0x1e0   : > { %v1172_v46 = vadd.f32 %v2641_v13, %v3689_v44  ;;  %v2644_v20 = vadd.f32 %v2643_v18, %v2642_v14  ;;  %2896 = vmatpush1.bf16.msra.mxu1 %v2895_v8  ;;  %v1510_v14 = vld [vmem:[#allocation8 + $0x120] sm:$0xff]  ;;  %v1515_v18 = vld [vmem:[#allocation8 + $0x148] sm:$0xff] }
 0x1e1   : > { %2898 = vmatprep.subr.bf16.mxu1 %v2897_v9  ;;  %v2903_v17 = vpack.c.bf16 %v1513_v15, %v1510_v14 }
 0x1e2   : > { %v1175_v23 = vadd.f32 %v2644_v20, %v3691_v48  ;;  %vm1216_vm6 = vcmp.gt.f32.partialorder %v1172_v46, 0.0  ;;  %v1232_v52 = vmul.f32 0.01, %v1172_v46  ;;  %v1517_v20 = vld [vmem:[#allocation8 + $0x158] sm:$0xff] }
 0x1e4   : > { %v2645_v24 = vpop.f32.mrb[48].mxu0  ;;  %v1248_v26 = vsel %vm1216_vm6, %v1172_v46, %v1232_v52  ;;  %vm1217_vm7 = vcmp.gt.f32.partialorder %v1175_v23, 0.0  ;;  %v1233_v27 = vmul.f32 0.01, %v1175_v23  ;;  %2900 = vmatpush1.bf16.msra.mxu1 %v2899_v21  ;;  %v2933_v46 = vpack.c.bf16 %v1515_v18, %v1512_v31 }
 0x1e5   : > { %v2646_v29 = vpop.f32.mrb[49].mxu0  ;;  %2774 = vmatprep.mubr.f32.mxu1 %v1248_v26  ;;  %2902 = vmatprep.subr.bf16.mxu1 %v2901_v22  ;;  %v1519_v22 = vld [vmem:[#allocation8 + $0x168] sm:$0xff] }
 0x1e6   : > { %v2647_v30 = vadd.f32 %v2646_v29, %v2645_v24  ;;  %v2648_v32 = vpop.f32.mrb[50].mxu0  ;;  %v1249_v44 = vsel %vm1217_vm7, %v1175_v23, %v1233_v27  ;;  %2934 = vmatprep.subr.bf16.mxu0 %v2933_v46  ;;  %v1518_v23 = vld [vmem:[#allocation8 + $0x160] sm:$0xff]  ;;  %v1521_v24 = vld [vmem:[#allocation8 + $0x178] sm:$0xff]  ;;  %v3304_v27 = vmov 0.0  }
 0x1e7   : > { %v2649_v33 = vpop.f32.mrb[51].mxu0  ;;  %2775 = vmatmul.mubr.f32.gmra.mrb[38].mxu1 %v1249_v44  ;;  %2936 = vmatpush3.bf16.msra.mxu0 %v2933_v46  ;;  %v2937_v26 = vpack.c.bf16 %v1521_v24, %v1518_v23  ;;  %v3737_v29 = vld [vmem:[%s3903_s4] ss:$0 sm:$0xff] }
 0x1e8   : > { %v1180_v34 = vadd.f32 %v2647_v30, %v3695_v62  ;;  %v2650_v36 = vadd.f32 %v2649_v33, %v2648_v32  ;;  %2904 = vmatpush1.bf16.msra.mxu1 %v2903_v17 }
 0x1e9   : > { %2938 = vmatprep.subr.bf16.mxu0 %v2937_v26 }
 0x1ea   : > { %v1183_v48 = vadd.f32 %v2650_v36, %v3697_v1  ;;  %vm1218_vm8 = vcmp.gt.f32.partialorder %v1180_v34, 0.0  ;;  %v1234_v37 = vmul.f32 0.01, %v1180_v34 }
 0x1eb   : > { %2940 = vmatpush3.bf16.msra.mxu0 %v2937_v26 }
 0x1ec   : > { %v2651_v39 = vpop.f32.mrb[52].mxu0  ;;  %v1250_v40 = vsel %vm1218_vm8, %v1180_v34, %v1234_v37  ;;  %vm1219_vm9 = vcmp.gt.f32.partialorder %v1183_v48, 0.0  ;;  %v1235_v41 = vmul.f32 0.01, %v1183_v48 }
 0x1ed   : > { %v2652_v42 = vpop.f32.mrb[53].mxu0  ;;  %2777 = vmatprep.mubr.f32.mxu1 %v1250_v40 }
 0x1ee   : > { %v2653_v7 = vadd.f32 %v2652_v42, %v2651_v39  ;;  %v2654_v43 = vpop.f32.mrb[54].mxu0  ;;  %v1251_v45 = vsel %vm1219_vm9, %v1183_v48, %v1235_v41 }
 0x1ef   : > { %v2655_v47 = vpop.f32.mrb[55].mxu0  ;;  %2778 = vmatmul.mubr.f32.gmra.mrb[40].mxu1 %v1251_v45 }
 0x1f0   : > { %v1188_v49 = vadd.f32 %v2653_v7, %v3701_v16  ;;  %v2656_v50 = vadd.f32 %v2655_v47, %v2654_v43 }
 0x1f2   : > { %v1191_v62 = vadd.f32 %v2656_v50, %v3703_v19  ;;  %vm1220_vm10 = vcmp.gt.f32.partialorder %v1188_v49, 0.0  ;;  %v1236_v1 = vmul.f32 0.01, %v1188_v49 }
 0x1f4   : > { %v2657_v51 = vpop.f32.mrb[56].mxu0  ;;  %v1252_v10 = vsel %vm1220_vm10, %v1188_v49, %v1236_v1  ;;  %vm1221_vm11 = vcmp.gt.f32.partialorder %v1191_v62, 0.0  ;;  %v1237_v53 = vmul.f32 0.01, %v1191_v62 }
 0x1f5   : > { %v2658_v54 = vpop.f32.mrb[57].mxu0  ;;  %2780 = vmatprep.mubr.f32.mxu1 %v1252_v10 }
 0x1f6   : > { %v2659_v56 = vadd.f32 %v2658_v54, %v2657_v51  ;;  %v2660_v57 = vpop.f32.mrb[58].mxu0  ;;  %v1253_v59 = vsel %vm1221_vm11, %v1191_v62, %v1237_v53 }
 0x1f7   : > { %v2661_v60 = vpop.f32.mrb[59].mxu0  ;;  %2781 = vmatmul.mubr.f32.gmra.mrb[42].mxu1 %v1253_v59 }
 0x1f8   : > { %v1196_v61 = vadd.f32 %v2659_v56, %v3707_v35  ;;  %v2662_v63 = vadd.f32 %v2661_v60, %v2660_v57 }
 0x1fa   : > { %v1199_v16 = vadd.f32 %v2662_v63, %v3709_v38  ;;  %vm1222_vm12 = vcmp.gt.f32.partialorder %v1196_v61, 0.0  ;;  %v1238_v19 = vmul.f32 0.01, %v1196_v61 }
 0x1fc   : > { %v2663_v0 = vpop.f32.mrb[60].mxu0  ;;  %v1254_v2 = vsel %vm1222_vm12, %v1196_v61, %v1238_v19  ;;  %vm1223_vm13 = vcmp.gt.f32.partialorder %v1199_v16, 0.0  ;;  %v1239_v3 = vmul.f32 0.01, %v1199_v16 }
 0x1fd   : > { %v2664_v4 = vpop.f32.mrb[61].mxu0  ;;  %2783 = vmatprep.mubr.f32.mxu1 %v1254_v2 }
 0x1fe   : > { %v2665_v5 = vadd.f32 %v2664_v4, %v2663_v0  ;;  %v2666_v25 = vpop.f32.mrb[62].mxu0  ;;  %v1255_v6 = vsel %vm1223_vm13, %v1199_v16, %v1239_v3 }
 0x1ff   : > { %v2667_v8 = vpop.f32.mrb[63].mxu0  ;;  %2784 = vmatmul.mubr.f32.gmra.mrb[44].mxu1 %v1255_v6 }
 0x200   : > { %v1204_v28 = vadd.f32 %v2665_v5, %v3713_v55  ;;  %v2668_v9 = vadd.f32 %v2667_v8, %v2666_v25  ;;  %v1520_v55 = vld [vmem:[#allocation8 + $0x170] sm:$0xff] }
 0x201   : > { %v2905_v21 = vpack.c.bf16 %v1520_v55, %v1517_v20 }
 0x202   : > { %v1207_v35 = vadd.f32 %v2668_v9, %v3715_v58  ;;  %vm1224_vm14 = vcmp.gt.f32.partialorder %v1204_v28, 0.0  ;;  %v1240_v38 = vmul.f32 0.01, %v1204_v28  ;;  %v1516_v58 = vld [vmem:[#allocation8 + $0x150] sm:$0xff] }
 0x203   : > { %v2907_v52 = vpack.c.bf16 %v1519_v22, %v1516_v58  ;;  %2906 = vmatprep.subr.bf16.mxu1 %v2905_v21 }
 0x204   : > { %v1256_v11 = vsel %vm1224_vm14, %v1204_v28, %v1240_v38  ;;  %vm1225_vm15 = vcmp.gt.f32.partialorder %v1207_v35, 0.0  ;;  %v1241_v12 = vmul.f32 0.01, %v1207_v35 }
 0x205   : > { %2786 = vmatprep.mubr.f32.mxu1 %v1256_v11  ;;  %2908 = vmatpush1.bf16.msra.mxu1 %v2907_v52 }
 0x206   : > { %v1257_v13 = vsel %vm1225_vm15, %v1207_v35, %v1241_v12 }
 0x207   : > { %2787 = vmatmul.mubr.f32.gmra.mrb[46].mxu1 %v1257_v13 }
 0x208   : > { %1586 = vmatprep.mubr.f32.mxu1 %v3304_v27 }
 0x2a2   : > { %v2767_v30 = vpop.f32.mrb[32].mxu1 }
 0x2a3   : > { %v1353_v32 = vadd.f32 %v2767_v30, %v3737_v29  ;;  %v1347_v44 = vpop.f32.mrb[33].mxu1 }
 0x2a4   : > { %v1348_v33 = vadd.f32 %v3737_v29, %v1347_v44 }
 0x2a5   : > { %v1443_v34 = vmul.f32 0.01, %v1353_v32  ;;  %vm1427_vm0 = vcmp.gt.f32.partialorder %v1353_v32, 0.0 }
 0x2a6   : > { %vm1426_vm1 = vcmp.gt.f32.partialorder %v1348_v33, 0.0  ;;  %v1442_v36 = vmul.f32 0.01, %v1348_v33 }
 0x2a7   : > { %v1459_v37 = vsel %vm1427_vm0, %v1353_v32, %v1443_v34 }
 0x2a8   : > { %v1458_v48 = vsel %vm1426_vm1, %v1348_v33, %v1442_v36 }
 0x2a9   : > { %1587 = vmatmul.mubr.f32.vlgmr.msra.gmra.mrb[48].mxu1 %v1458_v48  ;;  %2821 = vmatprep.mubr.f32.mxu0 %v1458_v48 }
 0x2aa   : > { %v2770_v39 = vpop.f32.mrb[34].mxu1  ;;  %2822 = vmatmul.mubr.f32.vlgmr.msra.gmra.mrb[64].mxu0 %v1459_v37  ;;  %1592 = vmatprep.mubr.f32.mxu1 %v3304_v27 }
 0x2ab   : > { %v1363_v40 = vadd.f32 %v2770_v39, %v3737_v29  ;;  %v1357_v41 = vpop.f32.mrb[35].mxu1 }
 0x2ac   : > { %v1358_v42 = vadd.f32 %v3737_v29, %v1357_v41 }
 0x2ad   : > { %v1445_v7 = vmul.f32 0.01, %v1363_v40  ;;  %1593 = vmatmul.mubr.f32.gmra.mrb[50].mxu1 %v1459_v37  ;;  %vm1429_vm3 = vcmp.gt.f32.partialorder %v1363_v40, 0.0 }
 0x2ae   : > { %v1444_v43 = vmul.f32 0.01, %v1358_v42  ;;  %1598 = vmatprep.mubr.f32.mxu1 %v3304_v27  ;;  %vm1428_vm2 = vcmp.gt.f32.partialorder %v1358_v42, 0.0 }
 0x2af   : > { %v1461_v47 = vsel %vm1429_vm3, %v1363_v40, %v1445_v7 }
 0x2b0   : > { %v1460_v45 = vsel %vm1428_vm2, %v1358_v42, %v1444_v43 }
 0x2b1   : > { %1599 = vmatmul.mubr.f32.gmra.mrb[52].mxu1 %v1460_v45  ;;  %2824 = vmatprep.mubr.f32.mxu0 %v1460_v45 }
 0x2b2   : > { %v2773_v49 = vpop.f32.mrb[36].mxu1  ;;  %2825 = vmatmul.mubr.f32.gmra.mrb[66].mxu0 %v1461_v47  ;;  %1604 = vmatprep.mubr.f32.mxu1 %v3304_v27 }
 0x2b3   : > { %v1373_v50 = vadd.f32 %v2773_v49, %v3737_v29  ;;  %v1367_v62 = vpop.f32.mrb[37].mxu1 }
 0x2b4   : > { %v1368_v1 = vadd.f32 %v3737_v29, %v1367_v62 }
 0x2b5   : > { %v1447_v51 = vmul.f32 0.01, %v1373_v50  ;;  %1605 = vmatmul.mubr.f32.gmra.mrb[54].mxu1 %v1461_v47  ;;  %vm1431_vm5 = vcmp.gt.f32.partialorder %v1373_v50, 0.0 }
 0x2b6   : > { %v1446_v10 = vmul.f32 0.01, %v1368_v1  ;;  %1610 = vmatprep.mubr.f32.mxu1 %v3304_v27  ;;  %vm1430_vm4 = vcmp.gt.f32.partialorder %v1368_v1, 0.0 }
 0x2b7   : > { %v1463_v54 = vsel %vm1431_vm5, %v1373_v50, %v1447_v51 }
 0x2b8   : > { %v1462_v53 = vsel %vm1430_vm4, %v1368_v1, %v1446_v10 }
 0x2b9   : > { %1611 = vmatmul.mubr.f32.gmra.mrb[56].mxu1 %v1462_v53  ;;  %2827 = vmatprep.mubr.f32.mxu0 %v1462_v53 }
 0x2ba   : > { %v2776_v56 = vpop.f32.mrb[38].mxu1  ;;  %2828 = vmatmul.mubr.f32.gmra.mrb[68].mxu0 %v1463_v54  ;;  %1616 = vmatprep.mubr.f32.mxu1 %v3304_v27 }
 0x2bb   : > { %v1383_v57 = vadd.f32 %v2776_v56, %v3737_v29  ;;  %v1377_v59 = vpop.f32.mrb[39].mxu1 }
 0x2bc   : > { %v1378_v60 = vadd.f32 %v3737_v29, %v1377_v59 }
 0x2bd   : > { %v1449_v61 = vmul.f32 0.01, %v1383_v57  ;;  %1617 = vmatmul.mubr.f32.gmra.mrb[58].mxu1 %v1463_v54  ;;  %vm1433_vm7 = vcmp.gt.f32.partialorder %v1383_v57, 0.0 }
 0x2be   : > { %v1448_v63 = vmul.f32 0.01, %v1378_v60  ;;  %1622 = vmatprep.mubr.f32.mxu1 %v3304_v27  ;;  %vm1432_vm6 = vcmp.gt.f32.partialorder %v1378_v60, 0.0 }
 0x2bf   : > { %v1465_v19 = vsel %vm1433_vm7, %v1383_v57, %v1449_v61 }
 0x2c0   : > { %v1464_v16 = vsel %vm1432_vm6, %v1378_v60, %v1448_v63 }
 0x2c1   : > { %1623 = vmatmul.mubr.f32.gmra.mrb[60].mxu1 %v1464_v16  ;;  %2830 = vmatprep.mubr.f32.mxu0 %v1464_v16 }
 0x2c2   : > { %v2779_v0 = vpop.f32.mrb[40].mxu1  ;;  %2831 = vmatmul.mubr.f32.gmra.mrb[70].mxu0 %v1465_v19  ;;  %1628 = vmatprep.mubr.f32.mxu1 %v3304_v27 }
 0x2c3   : > { %v1393_v2 = vadd.f32 %v2779_v0, %v3737_v29  ;;  %v1387_v3 = vpop.f32.mrb[41].mxu1 }
 0x2c4   : > { %v1388_v4 = vadd.f32 %v3737_v29, %v1387_v3 }
 0x2c5   : > { %v1451_v5 = vmul.f32 0.01, %v1393_v2  ;;  %1629 = vmatmul.mubr.f32.gmra.mrb[62].mxu1 %v1465_v19  ;;  %vm1435_vm9 = vcmp.gt.f32.partialorder %v1393_v2, 0.0 }
 0x2c6   : > { %v1450_v25 = vmul.f32 0.01, %v1388_v4  ;;  %1634 = vmatprep.mubr.f32.mxu1 %v3304_v27  ;;  %vm1434_vm8 = vcmp.gt.f32.partialorder %v1388_v4, 0.0 }
 0x2c7   : > { %v1467_v8 = vsel %vm1435_vm9, %v1393_v2, %v1451_v5 }
 0x2c8   : > { %v1466_v6 = vsel %vm1434_vm8, %v1388_v4, %v1450_v25 }
 0x2c9   : > { %1635 = vmatmul.mubr.f32.gmra.mrb[64].mxu1 %v1466_v6  ;;  %2833 = vmatprep.mubr.f32.mxu0 %v1466_v6 }
 0x2ca   : > { %v2782_v28 = vpop.f32.mrb[42].mxu1  ;;  %2834 = vmatmul.mubr.f32.gmra.mrb[72].mxu0 %v1467_v8  ;;  %1640 = vmatprep.mubr.f32.mxu1 %v3304_v27 }
 0x2cb   : > { %v1403_v9 = vadd.f32 %v2782_v28, %v3737_v29  ;;  %v1397_v35 = vpop.f32.mrb[43].mxu1 }
 0x2cc   : > { %v1398_v38 = vadd.f32 %v3737_v29, %v1397_v35 }
 0x2cd   : > { %v1453_v11 = vmul.f32 0.01, %v1403_v9  ;;  %1641 = vmatmul.mubr.f32.gmra.mrb[66].mxu1 %v1467_v8  ;;  %vm1437_vm11 = vcmp.gt.f32.partialorder %v1403_v9, 0.0 }
 0x2ce   : > { %v1452_v12 = vmul.f32 0.01, %v1398_v38  ;;  %1646 = vmatprep.mubr.f32.mxu1 %v3304_v27  ;;  %vm1436_vm10 = vcmp.gt.f32.partialorder %v1398_v38, 0.0 }
 0x2cf   : > { %v1469_v14 = vsel %vm1437_vm11, %v1403_v9, %v1453_v11 }
 0x2d0   : > { %v1468_v13 = vsel %vm1436_vm10, %v1398_v38, %v1452_v12 }
 0x2d1   : > { %1647 = vmatmul.mubr.f32.gmra.mrb[68].mxu1 %v1468_v13  ;;  %2836 = vmatprep.mubr.f32.mxu0 %v1468_v13 }
 0x2d2   : > { %v2785_v15 = vpop.f32.mrb[44].mxu1  ;;  %2837 = vmatmul.mubr.f32.gmra.mrb[74].mxu0 %v1469_v14  ;;  %1652 = vmatprep.mubr.f32.mxu1 %v3304_v27 }
 0x2d3   : > { %v1413_v31 = vadd.f32 %v2785_v15, %v3737_v29  ;;  %v1407_v17 = vpop.f32.mrb[45].mxu1 }
 0x2d4   : > { %v1408_v18 = vadd.f32 %v3737_v29, %v1407_v17 }
 0x2d5   : > { %v1455_v46 = vmul.f32 0.01, %v1413_v31  ;;  %1653 = vmatmul.mubr.f32.gmra.mrb[70].mxu1 %v1469_v14  ;;  %vm1439_vm13 = vcmp.gt.f32.partialorder %v1413_v31, 0.0 }
 0x2d6   : > { %v1454_v20 = vmul.f32 0.01, %v1408_v18  ;;  %1658 = vmatprep.mubr.f32.mxu1 %v3304_v27  ;;  %vm1438_vm12 = vcmp.gt.f32.partialorder %v1408_v18, 0.0 }
 0x2d7   : > { %v1471_v21 = vsel %vm1439_vm13, %v1413_v31, %v1455_v46 }
 0x2d8   : > { %v1470_v55 = vsel %vm1438_vm12, %v1408_v18, %v1454_v20 }
 0x2d9   : > { %1659 = vmatmul.mubr.f32.gmra.mrb[72].mxu1 %v1470_v55  ;;  %2839 = vmatprep.mubr.f32.mxu0 %v1470_v55 }
 0x2da   : > { %v2788_v58 = vpop.f32.mrb[46].mxu1  ;;  %2840 = vmatmul.mubr.f32.gmra.mrb[76].mxu0 %v1471_v21  ;;  %1664 = vmatprep.mubr.f32.mxu1 %v3304_v27 }
 0x2db   : > { %v1423_v22 = vadd.f32 %v2788_v58, %v3737_v29  ;;  %v1417_v23 = vpop.f32.mrb[47].mxu1 }
 0x2dc   : > { %v1418_v52 = vadd.f32 %v3737_v29, %v1417_v23  ;;  %v3774_v29 = vld [vmem:[%s3905_s6] ss:$0 sm:$0xff] }
 0x2dd   : > { %v1457_v24 = vmul.f32 0.01, %v1423_v22  ;;  %1665 = vmatmul.mubr.f32.gmra.mrb[74].mxu1 %v1471_v21  ;;  %vm1441_vm15 = vcmp.gt.f32.partialorder %v1423_v22, 0.0 }
 0x2de   : > { %v1456_v26 = vmul.f32 0.01, %v1418_v52  ;;  %1670 = vmatprep.mubr.f32.mxu1 %v3304_v27  ;;  %vm1440_vm14 = vcmp.gt.f32.partialorder %v1418_v52, 0.0 }
 0x2df   : > { %v1473_v32 = vsel %vm1441_vm15, %v1423_v22, %v1457_v24 }
 0x2e0   : > { %v1472_v30 = vsel %vm1440_vm14, %v1418_v52, %v1456_v26 }
 0x2e1   : > { %1671 = vmatmul.mubr.f32.gmra.mrb[76].mxu1 %v1472_v30  ;;  %2842 = vmatprep.mubr.f32.mxu0 %v1472_v30 }
 0x2e2   : > { %2843 = vmatmul.mubr.f32.gmra.mrb[78].mxu0 %v1473_v32  ;;  %1676 = vmatprep.mubr.f32.mxu1 %v3304_v27 }
 0x2e5   : > { %1677 = vmatmul.mubr.f32.gmra.mrb[78].mxu1 %v1473_v32 }
 0x37c   : > { %v1588_v44 = vpop.f32.mrb[48].mxu1 }
 0x37d   : > { %v1835_v33 = vadd.f32 %v3774_v29, %v1588_v44  ;;  %v1590_v34 = vpop.f32.mrb[49].mxu1  ;;  %v2823_v36 = vpop.f32.mrb[64].mxu0 }
 0x37e   : > { %v1749_v48 = vpop.f32.mrb[65].mxu0 }
 0x37f   : > { %1851 = vst [vmem:[%s3777_s14] sm:$0xff] %v1835_v33  ;;  %v2425_v27 = vpack.c.bf16 %v2823_v36, %v1749_v48 }
 0x380   : > { %v1594_v37 = vpop.f32.mrb[50].mxu1 }
 0x381   : > { %2469 = vst [vmem:[%s3780_s19 + $0x40] sm:$0xff] %v2425_v27   ;;  %v1836_v39 = vadd.f32 %v3774_v29, %v1594_v37  ;;  %v1596_v40 = vpop.f32.mrb[51].mxu1 }
 0x382   : > { %v2385_v41 = vpack.c.bf16 %v1596_v40, %v1590_v34 }
 0x383   : > { %1852 = vst [vmem:[%s3777_s14 + $0x8] sm:$0xff] %v1836_v39 }
 0x384   : > { %2386 = vst [vmem:[%s3780_s19] sm:$0xff] %v2385_v41   ;;  %v1600_v42 = vpop.f32.mrb[52].mxu1 }
 0x385   : > { %v1837_v7 = vadd.f32 %v3774_v29, %v1600_v42  ;;  %v1602_v43 = vpop.f32.mrb[53].mxu1  ;;  %v2826_v45 = vpop.f32.mrb[66].mxu0 }
 0x386   : > { %v1759_v47 = vpop.f32.mrb[67].mxu0 }
 0x387   : > { %1853 = vst [vmem:[%s3777_s14 + $0x10] sm:$0xff] %v1837_v7  ;;  %v2430_v49 = vpack.c.bf16 %v2826_v45, %v1759_v47 }
 0x388   : > { %v1606_v50 = vpop.f32.mrb[54].mxu1 }
 0x389   : > { %2470 = vst [vmem:[%s3780_s19 + $0x48] sm:$0xff] %v2430_v49   ;;  %v1838_v62 = vadd.f32 %v3774_v29, %v1606_v50  ;;  %v1608_v1 = vpop.f32.mrb[55].mxu1 }
 0x38a   : > { %v2390_v51 = vpack.c.bf16 %v1608_v1, %v1602_v43 }
 0x38b   : > { %1854 = vst [vmem:[%s3777_s14 + $0x18] sm:$0xff] %v1838_v62 }
 0x38c   : > { %2462 = vst [vmem:[%s3780_s19 + $0x8] sm:$0xff] %v2390_v51   ;;  %v1612_v10 = vpop.f32.mrb[56].mxu1 }
 0x38d   : > { %v1839_v53 = vadd.f32 %v3774_v29, %v1612_v10  ;;  %v1614_v54 = vpop.f32.mrb[57].mxu1  ;;  %v2829_v56 = vpop.f32.mrb[68].mxu0 }
 0x38e   : > { %v1769_v57 = vpop.f32.mrb[69].mxu0 }
 0x38f   : > { %1855 = vst [vmem:[%s3777_s14 + $0x20] sm:$0xff] %v1839_v53  ;;  %v2435_v59 = vpack.c.bf16 %v2829_v56, %v1769_v57 }
 0x390   : > { %v1618_v60 = vpop.f32.mrb[58].mxu1 }
 0x391   : > { %2471 = vst [vmem:[%s3780_s19 + $0x50] sm:$0xff] %v2435_v59   ;;  %v1840_v61 = vadd.f32 %v3774_v29, %v1618_v60  ;;  %v1620_v63 = vpop.f32.mrb[59].mxu1 }
 0x392   : > { %v2395_v16 = vpack.c.bf16 %v1620_v63, %v1614_v54 }
 0x393   : > { %1856 = vst [vmem:[%s3777_s14 + $0x28] sm:$0xff] %v1840_v61 }
 0x394   : > { %2463 = vst [vmem:[%s3780_s19 + $0x10] sm:$0xff] %v2395_v16   ;;  %v1624_v19 = vpop.f32.mrb[60].mxu1 }
 0x395   : > { %v1841_v0 = vadd.f32 %v3774_v29, %v1624_v19  ;;  %v1626_v2 = vpop.f32.mrb[61].mxu1  ;;  %v2832_v3 = vpop.f32.mrb[70].mxu0 }
 0x396   : > { %v1779_v4 = vpop.f32.mrb[71].mxu0 }
 0x397   : > { %1857 = vst [vmem:[%s3777_s14 + $0x30] sm:$0xff] %v1841_v0  ;;  %v2440_v5 = vpack.c.bf16 %v2832_v3, %v1779_v4 }
 0x398   : > { %v1630_v25 = vpop.f32.mrb[62].mxu1 }
 0x399   : > { %2472 = vst [vmem:[%s3780_s19 + $0x58] sm:$0xff] %v2440_v5   ;;  %v1842_v6 = vadd.f32 %v3774_v29, %v1630_v25  ;;  %v1632_v8 = vpop.f32.mrb[63].mxu1 }
 0x39a   : > { %v2400_v28 = vpack.c.bf16 %v1632_v8, %v1626_v2 }
 0x39b   : > { %1858 = vst [vmem:[%s3777_s14 + $0x38] sm:$0xff] %v1842_v6 }
 0x39c   : > { %2464 = vst [vmem:[%s3780_s19 + $0x18] sm:$0xff] %v2400_v28   ;;  %v1636_v9 = vpop.f32.mrb[64].mxu1 }
 0x39d   : > { %v1843_v35 = vadd.f32 %v3774_v29, %v1636_v9  ;;  %v1638_v38 = vpop.f32.mrb[65].mxu1  ;;  %v2835_v11 = vpop.f32.mrb[72].mxu0 }
 0x39e   : > { %v1789_v12 = vpop.f32.mrb[73].mxu0 }
 0x39f   : > { %1859 = vst [vmem:[%s3777_s14 + $0x40] sm:$0xff] %v1843_v35  ;;  %v2445_v13 = vpack.c.bf16 %v2835_v11, %v1789_v12 }
 0x3a0   : > { %v1642_v14 = vpop.f32.mrb[66].mxu1 }
 0x3a1   : > { %2473 = vst [vmem:[%s3780_s19 + $0x60] sm:$0xff] %v2445_v13   ;;  %v1844_v15 = vadd.f32 %v3774_v29, %v1642_v14  ;;  %v1644_v31 = vpop.f32.mrb[67].mxu1 }
 0x3a2   : > { %v2405_v17 = vpack.c.bf16 %v1644_v31, %v1638_v38 }
 0x3a3   : > { %1860 = vst [vmem:[%s3777_s14 + $0x48] sm:$0xff] %v1844_v15 }
 0x3a4   : > { %2465 = vst [vmem:[%s3780_s19 + $0x20] sm:$0xff] %v2405_v17   ;;  %v1648_v18 = vpop.f32.mrb[68].mxu1 }
 0x3a5   : > { %v1845_v46 = vadd.f32 %v3774_v29, %v1648_v18  ;;  %v1650_v20 = vpop.f32.mrb[69].mxu1  ;;  %v2838_v55 = vpop.f32.mrb[74].mxu0 }
 0x3a6   : > { %v1799_v21 = vpop.f32.mrb[75].mxu0 }
 0x3a7   : > { %1861 = vst [vmem:[%s3777_s14 + $0x50] sm:$0xff] %v1845_v46  ;;  %v2450_v58 = vpack.c.bf16 %v2838_v55, %v1799_v21 }
 0x3a8   : > { %v1654_v22 = vpop.f32.mrb[70].mxu1 }
 0x3a9   : > { %2474 = vst [vmem:[%s3780_s19 + $0x68] sm:$0xff] %v2450_v58   ;;  %v1846_v23 = vadd.f32 %v3774_v29, %v1654_v22  ;;  %v1656_v52 = vpop.f32.mrb[71].mxu1 }
 0x3aa   : > { %v2410_v24 = vpack.c.bf16 %v1656_v52, %v1650_v20 }
 0x3ab   : > { %1862 = vst [vmem:[%s3777_s14 + $0x58] sm:$0xff] %v1846_v23 }
 0x3ac   : > { %2466 = vst [vmem:[%s3780_s19 + $0x28] sm:$0xff] %v2410_v24   ;;  %v1660_v26 = vpop.f32.mrb[72].mxu1 }
 0x3ad   : > { %v1847_v30 = vadd.f32 %v3774_v29, %v1660_v26  ;;  %v1662_v32 = vpop.f32.mrb[73].mxu1  ;;  %v2841_v44 = vpop.f32.mrb[76].mxu0 }
 0x3ae   : > { %v1809_v33 = vpop.f32.mrb[77].mxu0 }
 0x3af   : > { %1863 = vst [vmem:[%s3777_s14 + $0x60] sm:$0xff] %v1847_v30  ;;  %v2455_v34 = vpack.c.bf16 %v2841_v44, %v1809_v33 }
 0x3b0   : > { %v1666_v36 = vpop.f32.mrb[74].mxu1 }
 0x3b1   : > { %2475 = vst [vmem:[%s3780_s19 + $0x70] sm:$0xff] %v2455_v34   ;;  %v1848_v48 = vadd.f32 %v3774_v29, %v1666_v36  ;;  %v1668_v27 = vpop.f32.mrb[75].mxu1 }
 0x3b2   : > { %v2415_v37 = vpack.c.bf16 %v1668_v27, %v1662_v32 }
 0x3b3   : > { %1864 = vst [vmem:[%s3777_s14 + $0x68] sm:$0xff] %v1848_v48 }
 0x3b4   : > { %2467 = vst [vmem:[%s3780_s19 + $0x30] sm:$0xff] %v2415_v37   ;;  %v1672_v39 = vpop.f32.mrb[76].mxu1 }
 0x3b5   : > { %v1849_v40 = vadd.f32 %v3774_v29, %v1672_v39  ;;  %v1674_v41 = vpop.f32.mrb[77].mxu1  ;;  %v2844_v42 = vpop.f32.mrb[78].mxu0 }
 0x3b6   : > { %v1819_v7 = vpop.f32.mrb[79].mxu0 }
 0x3b7   : > { %1865 = vst [vmem:[%s3777_s14 + $0x70] sm:$0xff] %v1849_v40  ;;  %v2460_v43 = vpack.c.bf16 %v2844_v42, %v1819_v7 }
 0x3b8   : > { %v1678_v45 = vpop.f32.mrb[78].mxu1 }
 0x3b9   : > { %2476 = vst [vmem:[%s3780_s19 + $0x78] sm:$0xff] %v2460_v43   ;;  %v1850_v47 = vadd.f32 %v3774_v29, %v1678_v45  ;;  %v1680_v49 = vpop.f32.mrb[79].mxu1 }
 0x3ba   : > { %v2420_v50 = vpack.c.bf16 %v1680_v49, %v1674_v41 }
 0x3bb   : > { %1866 = vst [vmem:[%s3777_s14 + $0x78] sm:$0xff] %v1850_v47 }
 0x3bc   : > { %2468 = vst [vmem:[%s3780_s19 + $0x38] sm:$0xff] %v2420_v50  }
 0x3bd   : > { %3225 = shalt.err (!%p3222_p4)
}
 0x3be   : > { %s3226_s24 = scalar_lea.hbm %s3829_s16, 2048  ;;  %s3230_s12 = scalar_lea.hbm %s3906_s7, 4096 }
 0x3bf   : > { %p3227_p9 = scmp.ne.s32.totalorder %s3829_s16, %s3226_s24  ;;  %p3231_p8 = scmp.lt.u32.totalorder %s3829_s16, %s3906_s7 }
 0x3c0   : > { %p3232_p13 = scmp.lt.u32.totalorder %s3230_s12, %s3226_s24  ;;  %p3234_p10 = scmp.lt.u32.totalorder %s3226_s24, %s3829_s16 }
 0x3c1   : > { %p3228_p0 = pnand %p3227_p9, %p3502_p5 }
 0x3c2   : > { %p3233_p6 = por %p3232_p13, %p3231_p8 }
 0x3c3   : > { %p3229_p11 = pneg %p3228_p0 }
 0x3c4   : > { %p3235_p3 = por %p3234_p10, %p3233_p6 }
 0x3c6   : > { %p3236_p7 = pnand %p3235_p3, %p3229_p11 }
 0x3c8   : > { %3239 = shalt.err (!%p3236_p7)
}
 0x3c9   : > { %s3306_s13 = smov 128   ;;  %s3307_s15 = smov 8  }
 0x3ca   : > { %2958 = dma.vmem_to_hbm [thread:$0]  (%p3502_p5), %s3831_s20, 2048, %s3829_s16, %s2029_s11, %s3306_s13, %s3306_s13, %s3307_s15  }
 0x3cb   : > { %s2034_s18 = scalar_lea.sflag [#allocation12], %s3550_s25 }
 0x3cc   : > { %s2381_s1 = sshll.u32 %s3381_s9, 10  ;;  %s2079_s24 = sshll.u32 %s3780_s19, 4  ;;  %s2080_s24 = int_to_ptr.vmem [resolvable:$true] %s2079_s24 }
 0x3cd   : > { %s2062_s12 = scalar_lea.hbm %s3907_s8, %s2381_s1  ;;  %s3308_s26 = smov 1024  }
 0x3ce   : > { %2959 = sst [smem:[#allocation14]] (%p3502_p5), %s3308_s26  ;;  %s3309_s25 = smov 2048  }
 0x3cf   : > { %2960 = sst [smem:[#allocation14 + $0x1]] (%p3502_p5), %s3309_s25  ;;  %s3310_s20 = smov 16  }
 0x3d0   : > { %2961 = sst [smem:[#allocation14 + $0x2]] (%p3502_p5), %s3310_s20  ;;  %s3311_s16 = smov 64  }
 0x3d1   : > { %2962 = sst [smem:[#allocation14 + $0x3]] (%p3502_p5), %s3311_s16  ;;  %s3312_s9 = smov 4  }
 0x3d2   : > { %2963 = sst [smem:[#allocation14 + $0x4]] (%p3502_p5), %s3311_s16  ;;  %s3313_s19 = smov [#allocation13]  }
 0x3d3   : > { %2964 = sst [smem:[#allocation14 + $0x5]] (%p3502_p5), %s3312_s9  ;;  %s3314_s11 = smov 0  }
 0x3d4   : > { %2965 = dma.general (%p3502_p5), %s2080_s24, 2048, %s2062_s12, %s2034_s18, %s3313_s19, [#allocation14], %s3314_s11, 0  }
 0x3d5 PF: > { %s3929_s10 = sld [smem:[#allocation20_spill]]  ;;  %s2107_s13 = sand.u32 1, %s3278_s27  }
 0x3d6   : > { %p3931_p2 = scmp.ge.s32.totalorder %s3290_s30, 2  ;;  %s2108_s15 = scalar_lea.sflag [#allocation4], %s2107_s13 }
 0x3db   : > { %p3930_p12 = scmp.ne.s32.totalorder %s3929_s10, 0 }
 0x3dd   : > { %p2983_p1 = pnand %p3931_p2, %p3930_p12 }
 0x3df   : > { %3269 = dma.done.wait (!%p2983_p1), %s2108_s15, 2048  }
 0x3e0   : > { %3271 = vsyncadd (!%p2983_p1), %s2108_s15, 4294965248  ;;  %s2117_s1 = scalar_lea.sflag [#allocation12], %s2107_s13 }
 0x3e1   : > { %3273 = dma.done.wait (!%p2983_p1), %s2117_s1, 2048  }
 0x3e2   : > { %3275 = vsyncadd (!%p2983_p1), %s2117_s1, 4294965248  ;;  %p27_p5 = scmp.ge.s32.totalorder %s3488_s17, 4   ;;  %s3932_s27 = smov %s3282_s28 }
 0x3e3   : > { %s3933_s28 = smov %s3286_s29  ;;  %s3934_s29 = smov %s3498_s22 }
 0x3e4   : > { %s3935_s30 = smov %s3488_s17  ;;  %29 = sbr.rel (!%p27_p5) target bundleno = 11 (0xb), region = 128 }
 0x3eb   :  { %2122 = vsyncpa [#allocation3], 1 }
 0x3ec   :  { %2124 = vsyncpa [#allocation3 + $0x1], 1 }
 0x3ed   :  { %2125 = vsyncpa [#allocation6], 1 }
 0x3ee   :  { %2126 = vsyncpa [#allocation9], 1 }
 0x3ef   :  { %2127 = vsyncpa [#allocation4], 1 }
 0x3f0   :  { %2129 = vsyncpa [#allocation4 + $0x1], 1 }
 0x3f1   :  { %2130 = vsyncpa [#allocation12], 1 }
 0x3f2   :  { %2132 = vsyncpa [#allocation12 + $0x1], 1 }

</bundles_post_ra>
